<compile_context>
chip_gen: v6e
topology: v6e:2x2x1
jax: 0.10.0
libtpu: 0.0.40
codegen_flags: <defaults>
</compile_context>

<pallas_src>
import functools

import jax
import jax.numpy as jnp
from jax import lax
from jax.experimental import pallas as pl
from jax.experimental.pallas import tpu as pltpu


_VPU_MAX_CH = 16  # at/below this channel count the MXU is <1% filled -> use VPU FMAs


def _vmem_cap_bytes():
    try:
        info = pltpu.get_tpu_info()
        cap = getattr(info, "vmem_capacity_bytes", None)
        if cap:
            return int(cap)
    except Exception:
        pass
    return 64 * 1024 * 1024  # conservative default (v7x per-core VMEM)


def _const_spec(shape):
    nd = len(shape)
    return pl.BlockSpec(shape, lambda b, _nd=nd: (0,) * _nd)


# ---------------------------------------------------------------------------
# fused per-level kernel:
#   1x1 lateral conv -> (+ top-down add) -> 3x3 conv (pad 1) -> (ECA) ->
#   store result (+ original feature channels = fused torch.cat)
# ---------------------------------------------------------------------------

def _level_kernel(*refs, h, w, cin, cout, k_size, has_td, use_eca, do_concat,
                  emit_li, use_mxu):
    it = iter(refs)
    x_ref = next(it)
    td_ref = next(it) if has_td else None
    wi_ref = next(it)
    bi_ref = next(it)
    wl_ref = next(it)
    bl_ref = next(it)
    we_ref = next(it) if use_eca else None
    out_ref = next(it)
    li_ref = next(it) if emit_li else None

    L = h * w
    x = x_ref[0].astype(jnp.float32)                         # (cin, L)

    # ---- 1x1 lateral conv --------------------------------------------------
    if use_mxu:
        lat = jnp.dot(wi_ref[...], x,
                      preferred_element_type=jnp.float32) + bi_ref[...]
    else:
        # VPU path: cin broadcast-FMAs over full-lane (cout, L) tiles.
        lat = jnp.zeros((cout, L), jnp.float32) + bi_ref[...]
        for c in range(cin):
            lat = lat + wi_ref[c] * x[c:c + 1, :]

    # ---- top-down add (fused) ----------------------------------------------
    if has_td:
        li = lat + td_ref[0].astype(jnp.float32)
    else:
        li = lat

    if emit_li:
        li_ref[0] = li.astype(li_ref.dtype)

    # ---- 3x3 conv, padding=1, via 9 zero-fill shifted taps ------------------
    col = lax.broadcasted_iota(jnp.int32, (1, L), 1) % w
    left_ok = col >= 1            # tap dx = -1 valid (does not cross row start)
    right_ok = col <= (w - 2)     # tap dx = +1 valid (does not cross row end)

    def shifted(arr, off):
        # tap[o] = arr[o + off] with zero fill outside [0, L)
        if off == 0:
            return arr
        if abs(off) >= L:
            return jnp.zeros_like(arr)
        z = jnp.zeros((arr.shape[0], abs(off)), arr.dtype)
        if off > 0:
            return jnp.concatenate([arr[:, off:], z], axis=1)
        return jnp.concatenate([z, arr[:, :off]], axis=1)

    taps = []
    for dy in (-1, 0, 1):
        for dx in (-1, 0, 1):
            t = shifted(li, dy * w + dx)
            if dx == -1:
                t = jnp.where(left_ok, t, 0.0)
            elif dx == 1:
                t = jnp.where(right_ok, t, 0.0)
            taps.append(t)

    if use_mxu:
        stacked = jnp.concatenate(taps, axis=0)               # (9*cout, L)
        acc = jnp.dot(wl_ref[...], stacked,
                      preferred_element_type=jnp.float32) + bl_ref[...]
    else:
        acc = jnp.zeros((cout, L), jnp.float32) + bl_ref[...]
        for ti, tap in enumerate(taps):
            base = ti * cout
            for c in range(cout):
                acc = acc + wl_ref[base + c] * tap[c:c + 1, :]

    # ---- fused ECA (pool -> k-tap channel conv -> sigmoid -> scale) ---------
    if use_eca:
        pad = (k_size - 1) // 2
        pooled = jnp.sum(acc, axis=1, keepdims=True) * (1.0 / L)    # (cout, 1)
        if pad > 0:
            z = jnp.zeros((pad, 1), jnp.float32)
            pooled = jnp.concatenate([z, pooled, z], axis=0)
        y = jnp.zeros((cout, 1), jnp.float32)
        for j in range(k_size):
            y = y + we_ref[j] * pooled[j:j + cout, :]
        acc = acc * jax.nn.sigmoid(y)          # attention applied in f32

    out_ref[0, :cout, :] = acc.astype(out_ref.dtype)
    if do_concat:
        # fused torch.cat([result, x], dim=1): x is already in VMEM.
        out_ref[0, cout:cout + cin, :] = x.astype(out_ref.dtype)


# ---------------------------------------------------------------------------
# pure-JAX reference pieces (also used as graceful fallback for huge levels)
# ---------------------------------------------------------------------------

def _conv2d_ref(x, w, b, padding):
    out = lax.conv_general_dilated(
        x.astype(jnp.float32), w.astype(jnp.float32), window_strides=(1, 1),
        padding=padding, dimension_numbers=("NCHW", "OIHW", "NCHW"),
        precision=lax.Precision.HIGHEST)
    return out + b.astype(jnp.float32)[None, :, None, None]


def eca_ref(x, w, k_size=3):
    B, C, H, W = x.shape
    pad = (k_size - 1) // 2
    pooled = x.mean(axis=(2, 3))
    pooled_p = jnp.pad(pooled, ((0, 0), (pad, pad)))
    y = sum(w[j] * pooled_p[:, j:j + C] for j in range(k_size))
    att = jax.nn.sigmoid(y)
    return x * att[:, :, None, None]


def level_ref(x, td, wi, bi, wl, bl, we=None, *, use_eca, do_concat, k_size=3):
    lat = _conv2d_ref(x, wi[:, :, None, None], bi, "VALID")
    li = lat + td if td is not None else lat
    r = _conv2d_ref(li, wl, bl, ((1, 1), (1, 1)))
    if use_eca:
        r = eca_ref(r, we, k_size)
    if do_concat:
        r = jnp.concatenate([r, x.astype(r.dtype)], axis=1)
    return r, li


def _level_xla(x, td, wi, bi, wl, bl, we, *, use_eca, do_concat, emit_li, k_size):
    r, li = level_ref(x, td, wi, bi, wl, bl, we, use_eca=use_eca,
                      do_concat=do_concat, k_size=k_size)
    B, C, H, W = r.shape
    r_flat = r.astype(x.dtype).reshape(B, C, H * W)
    li_flat = (li.astype(x.dtype).reshape(B, li.shape[1], H * W)
               if emit_li else None)
    return r_flat, li_flat


# ---------------------------------------------------------------------------
# fused-level wrapper
# ---------------------------------------------------------------------------

def fpn_level(x, td, wi, bi, wl, bl, we=None, *, use_eca, do_concat, emit_li,
              k_size=3, vmem_budget_bytes=None):
    """One fused FPN level.

    x: (B, Cin, H, W) original feature map, td: (B, Cout, H, W) top-down or None.
    Returns (result_flat (B, Cout[+Cin], H*W), last_inner_flat (B, Cout, H*W) | None).
    """
    B, Cin, H, W = x.shape
    Cout = int(wi.shape[0])
    L = H * W
    has_td = td is not None
    use_mxu = (Cin > _VPU_MAX_CH) or (Cout > _VPU_MAX_CH)
    Ctot = Cout + (Cin if do_concat else 0)
    itemsize = jnp.dtype(x.dtype).itemsize
    f32 = jnp.float32

    # VMEM feasibility of the fused per-image block (double-buffered I/O blocks
    # + in-kernel f32 temporaries).  Budget from the hardware => generation aware.
    blk = L * (Cin + (Cout if has_td else 0) + Ctot + (Cout if emit_li else 0))
    tmp = L * (Cin + 3 * Cout + (9 * Cout if use_mxu else 2 * Cout))
    est = 2 * blk * itemsize + 4 * tmp + 4 * (10 * Cout * Cout + 4 * Cout)
    cap = _vmem_cap_bytes()
    budget = vmem_budget_bytes if vmem_budget_bytes is not None else int(0.8 * cap)
    if est > budget:
        # TODO(synk): spatially-tiled Pallas variant (row tiles + cross-tile ECA
        # pooling) for maps too large to hold one image per VMEM block; for now
        # such levels fall back to plain XLA convs.
        return _level_xla(x, td, wi, bi, wl, bl, we, use_eca=use_eca,
                          do_concat=do_concat, emit_li=emit_li, k_size=k_size)

    x3 = x.reshape(B, Cin, L)                    # metadata-only reshape

    if use_mxu:
        wi_k = wi.astype(f32)                                              # (Cout, Cin)
        wl_k = jnp.transpose(wl, (0, 2, 3, 1)).reshape(Cout, 9 * Cout).astype(f32)
    else:
        wi_k = jnp.transpose(wi, (1, 0)).astype(f32)[:, :, None]           # (Cin, Cout, 1)
        wl_k = jnp.transpose(wl, (2, 3, 1, 0)).reshape(9 * Cout, Cout).astype(f32)[:, :, None]
    bi_k = bi.reshape(Cout, 1).astype(f32)
    bl_k = bl.reshape(Cout, 1).astype(f32)

    inputs = [x3]
    in_specs = [pl.BlockSpec((1, Cin, L), lambda b: (b, 0, 0))]
    if has_td:
        inputs.append(td.reshape(B, Cout, L))
        in_specs.append(pl.BlockSpec((1, Cout, L), lambda b: (b, 0, 0)))
    for wgt in (wi_k, bi_k, wl_k, bl_k):
        inputs.append(wgt)
        in_specs.append(_const_spec(wgt.shape))
    if use_eca:
        inputs.append(we.astype(f32))
        in_specs.append(pl.BlockSpec(memory_space=pltpu.MemorySpace.SMEM))

    r_sds = jax.ShapeDtypeStruct((B, Ctot, L), x.dtype)
    r_spec = pl.BlockSpec((1, Ctot, L), lambda b: (b, 0, 0))
    if emit_li:
        out_shape = (r_sds, jax.ShapeDtypeStruct((B, Cout, L), x.dtype))
        out_specs = (r_spec, pl.BlockSpec((1, Cout, L), lambda b: (b, 0, 0)))
    else:
        out_shape = r_sds
        out_specs = r_spec

    flops = int(B * L * (2 * Cin * Cout + 18 * Cout * Cout + 6 * Cout))
    bytes_accessed = int(itemsize * (x3.size + (td.size if has_td else 0)
                                     + B * Ctot * L
                                     + (B * Cout * L if emit_li else 0))
                         + 4 * (wi_k.size + wl_k.size + 2 * Cout
                                + (k_size if use_eca else 0)))
    cost = pl.CostEstimate(flops=flops,
                           transcendentals=int(B * Cout) if use_eca else 0,
                           bytes_accessed=bytes_accessed)

    kern = functools.partial(_level_kernel, h=H, w=W, cin=Cin, cout=Cout,
                             k_size=k_size, has_td=has_td, use_eca=use_eca,
                             do_concat=do_concat, emit_li=emit_li, use_mxu=use_mxu)

    outs = pl.pallas_call(
        kern,
        out_shape=out_shape,
        grid_spec=pltpu.PrefetchScalarGridSpec(
            num_scalar_prefetch=0,
            grid=(B,),
            in_specs=in_specs,
            out_specs=out_specs),
        compiler_params=pltpu.CompilerParams(
            dimension_semantics=("parallel",),
            vmem_limit_bytes=int(min(cap, max(est + (8 << 20), 32 << 20)))),
        cost_estimate=cost,
    )(*inputs)

    if emit_li:
        r, li = outs
        return r, li
    return outs, None


# ---------------------------------------------------------------------------
# nearest upsample (broadcast/reshape fast path for the exact-2x FPN case)
# ---------------------------------------------------------------------------

def nearest_resize(x, size):
    """F.interpolate(mode='nearest') for NCHW."""
    B, C, Hc, Wc = x.shape
    Ho, Wo = size
    if Ho == 2 * Hc and Wo == 2 * Wc:
        y = jnp.broadcast_to(x[:, :, :, None, :, None], (B, C, Hc, 2, Wc, 2))
        return y.reshape(B, C, Ho, Wo)
    # TODO(synk): non-integer ratios fall back to an XLA gather (no clean
    # broadcast/reshape or Pallas formulation for arbitrary resize).
    hi = (jnp.arange(Ho) * Hc) // Ho
    wi = (jnp.arange(Wo) * Wc) // Wo
    return x[:, :, hi[:, None], wi[None, :]]


# ---------------------------------------------------------------------------
# FPN forward (Pallas-backed, one fused kernel per level)
# ---------------------------------------------------------------------------

def fpn_forward(feats, params, *, use_eca=True, usecount=1, k_size=3):
    """feats: list of (B, Cin_i, H_i, W_i) maps in increasing depth order."""
    n = len(feats)
    base_concat = (usecount % 3 != 0)      # first forward call: usecount == 1
    B = feats[0].shape[0]
    Cout = int(params["inner_w"][-1].shape[0])

    def concat_for(pos):                   # torch only concats the first 4 levels
        return base_concat and pos < 4

    r, last_inner = fpn_level(
        feats[-1], None, params["inner_w"][-1], params["inner_b"][-1],
        params["layer_w"][-1], params["layer_b"][-1], params.get("eca_w"),
        use_eca=False, do_concat=concat_for(n - 1), emit_li=True, k_size=k_size)
    results = [r]
    prev_hw = feats[-1].shape[-2:]

    for idx in range(n - 2, -1, -1):
        H, W = feats[idx].shape[-2:]
        li4 = last_inner.reshape(B, Cout, prev_hw[0], prev_hw[1])
        td = nearest_resize(li4, (H, W))
        emit_li = idx > 0
        r, li = fpn_level(
            feats[idx], td, params["inner_w"][idx], params["inner_b"][idx],
            params["layer_w"][idx], params["layer_b"][idx], params.get("eca_w"),
            use_eca=use_eca, do_concat=concat_for(idx), emit_li=emit_li,
            k_size=k_size)
        results.insert(0, r)
        last_inner = li
        prev_hw = (H, W)

    # single un-flatten at the very end of the whole top-down pass
    out = []
    for r, f in zip(results, feats):
        Hi, Wi = f.shape[-2:]
        out.append(r.reshape(B, r.shape[1], Hi, Wi))
    # extra_blocks is None in this configuration (conv_extra branch not taken).
    return out


def fpn_ref(feats, params, *, use_eca=True, usecount=1, k_size=3):
    n = len(feats)
    base_concat = (usecount % 3 != 0)
    r, last_inner = level_ref(
        feats[-1], None, params["inner_w"][-1], params["inner_b"][-1],
        params["layer_w"][-1], params["layer_b"][-1], params.get("eca_w"),
        use_eca=False, do_concat=base_concat and (n - 1) < 4, k_size=k_size)
    results = [r]
    for idx in range(n - 2, -1, -1):
        td = nearest_resize(last_inner, feats[idx].shape[-2:])
        r, last_inner = level_ref(
            feats[idx], td, params["inner_w"][idx], params["inner_b"][idx],
            params["layer_w"][idx], params["layer_b"][idx], params.get("eca_w"),
            use_eca=use_eca, do_concat=base_concat and idx < 4, k_size=k_size)
        results.insert(0, r)
    return results


# ---------------------------------------------------------------------------
# test
# ---------------------------------------------------------------------------

if __name__ == "__main__":
    B, Cout, k_size = 2, 8, 3
    in_channels_list = [4, 4, 8, 8]
    spatials = [(16, 16), (8, 8), (4, 4), (2, 2)]

    keys = iter(jax.random.split(jax.random.PRNGKey(0), 64))

    feats = [jax.random.normal(next(keys), (B, c, h, w), dtype=jnp.float32)
             for c, (h, w) in zip(in_channels_list, spatials)]

    params = {
        "inner_w": [0.2 * jax.random.normal(next(keys), (Cout, c), jnp.float32)
                    for c in in_channels_list],
        "inner_b": [0.1 * jax.random.normal(next(keys), (Cout,), jnp.float32)
                    for _ in in_channels_list],
        "layer_w": [0.1 * jax.random.normal(next(keys), (Cout, Cout, 3, 3),
                                            jnp.float32)
                    for _ in in_channels_list],
        "layer_b": [0.1 * jax.random.normal(next(keys), (Cout,), jnp.float32)
                    for _ in in_channels_list],
        "eca_w": (jax.random.uniform(next(keys), (k_size,), jnp.float32) - 0.5)
                 * (2.0 / (k_size ** 0.5)),
    }

    outs = jax.block_until_ready(
        fpn_forward(feats, params, use_eca=True, usecount=1, k_size=k_size))
    refs = fpn_ref(feats, params, use_eca=True, usecount=1, k_size=k_size)

    assert len(outs) == len(refs)
    for o, r in zip(outs, refs):
        assert o.shape == r.shape, (o.shape, r.shape)
        assert jnp.allclose(o, r, atol=1e-4, rtol=1e-4), \
            float(jnp.max(jnp.abs(o - r)))

    # Also exercise the MXU path (single K-stacked (Cout, 9*Cin) matmul) used for
    # realistic channel counts (> _VPU_MAX_CH) on one fused level.
    Cb, Hb, Wb = 40, 8, 8
    xb = jax.random.normal(next(keys), (B, Cb, Hb, Wb), jnp.float32)
    tdb = jax.random.normal(next(keys), (B, Cb, Hb, Wb), jnp.float32)
    wib = 0.1 * jax.random.normal(next(keys), (Cb, Cb), jnp.float32)
    bib = 0.1 * jax.random.normal(next(keys), (Cb,), jnp.float32)
    wlb = 0.05 * jax.random.normal(next(keys), (Cb, Cb, 3, 3), jnp.float32)
    blb = 0.1 * jax.random.normal(next(keys), (Cb,), jnp.float32)

    rk, lik = fpn_level(xb, tdb, wib, bib, wlb, blb, params["eca_w"],
                        use_eca=True, do_concat=True, emit_li=True, k_size=k_size)
    rk = jax.block_until_ready(rk)
    rr, lir = level_ref(xb, tdb, wib, bib, wlb, blb, params["eca_w"],
                        use_eca=True, do_concat=True, k_size=k_size)
    assert jnp.allclose(rk.reshape(rr.shape), rr, atol=2e-4, rtol=2e-4), \
        float(jnp.max(jnp.abs(rk.reshape(rr.shape) - rr)))
    assert jnp.allclose(lik.reshape(lir.shape), lir, atol=2e-4, rtol=2e-4)

    # And the graceful fallback branch used when the fused per-image block would
    # not fit the VMEM budget (forced tiny budget here).
    rf, _ = fpn_level(xb, tdb, wib, bib, wlb, blb, params["eca_w"],
                      use_eca=True, do_concat=True, emit_li=True, k_size=k_size,
                      vmem_budget_bytes=1024)
    assert jnp.allclose(rf.reshape(rr.shape), rr, atol=2e-4, rtol=2e-4)

    print("KERNEL_OK")
</pallas_src>

<mosaic_0001>
module attributes {stable_mosaic.version = 11 : i64} {
  func.func @_level_kernel(%arg0: i32, %arg1: memref<1x8x4xf32, #tpu.memory_space<vmem>>, %arg2: memref<8x8x1xf32, #tpu.memory_space<vmem>>, %arg3: memref<8x1xf32, #tpu.memory_space<vmem>>, %arg4: memref<72x8x1xf32, #tpu.memory_space<vmem>>, %arg5: memref<8x1xf32, #tpu.memory_space<vmem>>, %arg6: memref<1x16x4xf32, #tpu.memory_space<vmem>>, %arg7: memref<1x8x4xf32, #tpu.memory_space<vmem>>) attributes {dimension_semantics = [#tpu.dimension_semantics<parallel>], iteration_bounds = array<i64: 2>, scalar_prefetch = 0 : i64, scratch_operands = 0 : i64, tpu.core_type = #tpu.core_type<tc>, window_params = [{transform_indices = @transform_0, window_bounds = array<i64: 1, 8, 4>}, {pipeline_mode = #tpu.pipeline_mode<synchronous>, transform_indices = @transform_1, window_bounds = array<i64: 8, 8, 1>}, {pipeline_mode = #tpu.pipeline_mode<synchronous>, transform_indices = @transform_2, window_bounds = array<i64: 8, 1>}, {pipeline_mode = #tpu.pipeline_mode<synchronous>, transform_indices = @transform_3, window_bounds = array<i64: 72, 8, 1>}, {pipeline_mode = #tpu.pipeline_mode<synchronous>, transform_indices = @transform_4, window_bounds = array<i64: 8, 1>}, {transform_indices = @transform_5, window_bounds = array<i64: 1, 16, 4>}, {transform_indices = @transform_6, window_bounds = array<i64: 1, 8, 4>}]} {
    %c0 = arith.constant 0 : index
    %c0_0 = arith.constant 0 : index
    %c0_1 = arith.constant 0 : index
    %0 = vector.load %arg1[%c0, %c0_0, %c0_1] : memref<1x8x4xf32, #tpu.memory_space<vmem>>, vector<1x8x4xf32>
    %1 = vector.shape_cast %0 : vector<1x8x4xf32> to vector<8x4xf32>
    %cst = arith.constant 0.000000e+00 : f32
    %2 = vector.broadcast %cst : f32 to vector<8x4xf32>
    %c0_2 = arith.constant 0 : index
    %c0_3 = arith.constant 0 : index
    %3 = vector.load %arg3[%c0_2, %c0_3] : memref<8x1xf32, #tpu.memory_space<vmem>>, vector<8x1xf32>
    %4 = vector.broadcast %3 : vector<8x1xf32> to vector<8x4xf32>
    %5 = arith.addf %2, %4 : vector<8x4xf32>
    %c0_4 = arith.constant 0 : index
    %c0_5 = arith.constant 0 : index
    %c0_6 = arith.constant 0 : index
    %6 = vector.load %arg2[%c0_4, %c0_5, %c0_6] : memref<8x8x1xf32, #tpu.memory_space<vmem>>, vector<1x8x1xf32>
    %7 = vector.shape_cast %6 : vector<1x8x1xf32> to vector<8x1xf32>
    %8 = vector.extract_strided_slice %1 {offsets = [0, 0], sizes = [1, 4], strides = [1, 1]} : vector<8x4xf32> to vector<1x4xf32>
    %9 = vector.broadcast %7 : vector<8x1xf32> to vector<8x4xf32>
    %10 = vector.broadcast %8 : vector<1x4xf32> to vector<8x4xf32>
    %11 = arith.mulf %9, %10 : vector<8x4xf32>
    %12 = arith.addf %5, %11 : vector<8x4xf32>
    %c1 = arith.constant 1 : index
    %c0_7 = arith.constant 0 : index
    %c0_8 = arith.constant 0 : index
    %13 = vector.load %arg2[%c1, %c0_7, %c0_8] : memref<8x8x1xf32, #tpu.memory_space<vmem>>, vector<1x8x1xf32>
    %14 = vector.shape_cast %13 : vector<1x8x1xf32> to vector<8x1xf32>
    %15 = vector.extract_strided_slice %1 {offsets = [1, 0], sizes = [1, 4], strides = [1, 1]} : vector<8x4xf32> to vector<1x4xf32>
    %16 = vector.broadcast %14 : vector<8x1xf32> to vector<8x4xf32>
    %17 = vector.broadcast %15 : vector<1x4xf32> to vector<8x4xf32>
    %18 = arith.mulf %16, %17 : vector<8x4xf32>
    %19 = arith.addf %12, %18 : vector<8x4xf32>
    %c2 = arith.constant 2 : index
    %c0_9 = arith.constant 0 : index
    %c0_10 = arith.constant 0 : index
    %20 = vector.load %arg2[%c2, %c0_9, %c0_10] : memref<8x8x1xf32, #tpu.memory_space<vmem>>, vector<1x8x1xf32>
    %21 = vector.shape_cast %20 : vector<1x8x1xf32> to vector<8x1xf32>
    %22 = vector.extract_strided_slice %1 {offsets = [2, 0], sizes = [1, 4], strides = [1, 1]} : vector<8x4xf32> to vector<1x4xf32>
    %23 = vector.broadcast %21 : vector<8x1xf32> to vector<8x4xf32>
    %24 = vector.broadcast %22 : vector<1x4xf32> to vector<8x4xf32>
    %25 = arith.mulf %23, %24 : vector<8x4xf32>
    %26 = arith.addf %19, %25 : vector<8x4xf32>
    %c3 = arith.constant 3 : index
    %c0_11 = arith.constant 0 : index
    %c0_12 = arith.constant 0 : index
    %27 = vector.load %arg2[%c3, %c0_11, %c0_12] : memref<8x8x1xf32, #tpu.memory_space<vmem>>, vector<1x8x1xf32>
    %28 = vector.shape_cast %27 : vector<1x8x1xf32> to vector<8x1xf32>
    %29 = vector.extract_strided_slice %1 {offsets = [3, 0], sizes = [1, 4], strides = [1, 1]} : vector<8x4xf32> to vector<1x4xf32>
    %30 = vector.broadcast %28 : vector<8x1xf32> to vector<8x4xf32>
    %31 = vector.broadcast %29 : vector<1x4xf32> to vector<8x4xf32>
    %32 = arith.mulf %30, %31 : vector<8x4xf32>
    %33 = arith.addf %26, %32 : vector<8x4xf32>
    %c4 = arith.constant 4 : index
    %c0_13 = arith.constant 0 : index
    %c0_14 = arith.constant 0 : index
    %34 = vector.load %arg2[%c4, %c0_13, %c0_14] : memref<8x8x1xf32, #tpu.memory_space<vmem>>, vector<1x8x1xf32>
    %35 = vector.shape_cast %34 : vector<1x8x1xf32> to vector<8x1xf32>
    %36 = vector.extract_strided_slice %1 {offsets = [4, 0], sizes = [1, 4], strides = [1, 1]} : vector<8x4xf32> to vector<1x4xf32>
    %37 = vector.broadcast %35 : vector<8x1xf32> to vector<8x4xf32>
    %38 = vector.broadcast %36 : vector<1x4xf32> to vector<8x4xf32>
    %39 = arith.mulf %37, %38 : vector<8x4xf32>
    %40 = arith.addf %33, %39 : vector<8x4xf32>
    %c5 = arith.constant 5 : index
    %c0_15 = arith.constant 0 : index
    %c0_16 = arith.constant 0 : index
    %41 = vector.load %arg2[%c5, %c0_15, %c0_16] : memref<8x8x1xf32, #tpu.memory_space<vmem>>, vector<1x8x1xf32>
    %42 = vector.shape_cast %41 : vector<1x8x1xf32> to vector<8x1xf32>
    %43 = vector.extract_strided_slice %1 {offsets = [5, 0], sizes = [1, 4], strides = [1, 1]} : vector<8x4xf32> to vector<1x4xf32>
    %44 = vector.broadcast %42 : vector<8x1xf32> to vector<8x4xf32>
    %45 = vector.broadcast %43 : vector<1x4xf32> to vector<8x4xf32>
    %46 = arith.mulf %44, %45 : vector<8x4xf32>
    %47 = arith.addf %40, %46 : vector<8x4xf32>
    %c6 = arith.constant 6 : index
    %c0_17 = arith.constant 0 : index
    %c0_18 = arith.constant 0 : index
    %48 = vector.load %arg2[%c6, %c0_17, %c0_18] : memref<8x8x1xf32, #tpu.memory_space<vmem>>, vector<1x8x1xf32>
    %49 = vector.shape_cast %48 : vector<1x8x1xf32> to vector<8x1xf32>
    %50 = vector.extract_strided_slice %1 {offsets = [6, 0], sizes = [1, 4], strides = [1, 1]} : vector<8x4xf32> to vector<1x4xf32>
    %51 = vector.broadcast %49 : vector<8x1xf32> to vector<8x4xf32>
    %52 = vector.broadcast %50 : vector<1x4xf32> to vector<8x4xf32>
    %53 = arith.mulf %51, %52 : vector<8x4xf32>
    %54 = arith.addf %47, %53 : vector<8x4xf32>
    %c7 = arith.constant 7 : index
    %c0_19 = arith.constant 0 : index
    %c0_20 = arith.constant 0 : index
    %55 = vector.load %arg2[%c7, %c0_19, %c0_20] : memref<8x8x1xf32, #tpu.memory_space<vmem>>, vector<1x8x1xf32>
    %56 = vector.shape_cast %55 : vector<1x8x1xf32> to vector<8x1xf32>
    %57 = vector.extract_strided_slice %1 {offsets = [7, 0], sizes = [1, 4], strides = [1, 1]} : vector<8x4xf32> to vector<1x4xf32>
    %58 = vector.broadcast %56 : vector<8x1xf32> to vector<8x4xf32>
    %59 = vector.broadcast %57 : vector<1x4xf32> to vector<8x4xf32>
    %60 = arith.mulf %58, %59 : vector<8x4xf32>
    %61 = arith.addf %54, %60 : vector<8x4xf32>
    %c0_21 = arith.constant 0 : index
    %c0_22 = arith.constant 0 : index
    %c0_23 = arith.constant 0 : index
    %62 = vector.load %arg7[%c0_21, %c0_22, %c0_23] : memref<1x8x4xf32, #tpu.memory_space<vmem>>, vector<1x8x4xf32>
    %63 = vector.shape_cast %62 : vector<1x8x4xf32> to vector<8x4xf32>
    %64 = vector.shape_cast %61 : vector<8x4xf32> to vector<1x8x4xf32>
    tpu.vector_store %arg7[%c0_21, %c0_22, %c0_23], %64 {strides = array<i32>} : memref<1x8x4xf32, #tpu.memory_space<vmem>>, vector<1x8x4xf32>,
    %65 = tpu.iota {dimensions = array<i32: 1>} : vector<1x4xi32>
    %c2_i32 = arith.constant 2 : i32
    %c0_i32 = arith.constant 0 : i32
    %66 = arith.cmpi eq, %c2_i32, %c0_i32 : i32
    %c1_i32 = arith.constant 1 : i32
    %67 = arith.select %66, %c1_i32, %c2_i32 : i32
    %68 = vector.broadcast %67 : i32 to vector<1x4xi32>
    %69 = arith.remsi %65, %68 : vector<1x4xi32>
    %c0_i32_24 = arith.constant 0 : i32
    %70 = vector.broadcast %c0_i32_24 : i32 to vector<1x4xi32>
    %71 = arith.cmpi ne, %69, %70 : vector<1x4xi32>
    %c0_i32_25 = arith.constant 0 : i32
    %72 = vector.broadcast %c0_i32_25 : i32 to vector<1x4xi32>
    %73 = arith.cmpi slt, %69, %72 : vector<1x4xi32>
    %c0_i32_26 = arith.constant 0 : i32
    %74 = arith.cmpi slt, %67, %c0_i32_26 : i32
    %75 = vector.broadcast %74 : i1 to vector<1x4xi1>
    %76 = vector.broadcast %75 : vector<1x4xi1> to vector<1x4xi1>
    %77 = arith.xori %73, %76 : vector<1x4xi1>
    %78 = arith.andi %77, %71 : vector<1x4xi1>
    %79 = vector.broadcast %67 : i32 to vector<1x4xi32>
    %80 = arith.addi %69, %79 : vector<1x4xi32>
    %81 = arith.select %78, %80, %69 : vector<1x4xi1>, vector<1x4xi32>
    %c1_i32_27 = arith.constant 1 : i32
    %82 = vector.broadcast %c1_i32_27 : i32 to vector<1x4xi32>
    %83 = arith.cmpi sge, %81, %82 : vector<1x4xi32>
    %c0_i32_28 = arith.constant 0 : i32
    %84 = vector.broadcast %c0_i32_28 : i32 to vector<1x4xi32>
    %85 = arith.cmpi sle, %81, %84 : vector<1x4xi32>
    %cst_29 = arith.constant 0.000000e+00 : f32
    %86 = vector.broadcast %cst_29 : f32 to vector<8x3xf32>
    %87 = vector.extract_strided_slice %61 {offsets = [0, 0], sizes = [8, 1], strides = [1, 1]} : vector<8x4xf32> to vector<8x1xf32>
    %88 = tpu.concatenate %86, %87 in 1 : vector<8x3xf32>, vector<8x1xf32> -> vector<8x4xf32>
    %cst_30 = arith.constant 0.000000e+00 : f32
    %89 = vector.shape_cast %83 : vector<1x4xi1> to vector<1x4xi1>
    %90 = vector.broadcast %89 : vector<1x4xi1> to vector<8x4xi1>
    %91 = vector.broadcast %cst_30 : f32 to vector<8x4xf32>
    %92 = arith.select %90, %88, %91 : vector<8x4xi1>, vector<8x4xf32>
    %cst_31 = arith.constant 0.000000e+00 : f32
    %93 = vector.broadcast %cst_31 : f32 to vector<8x2xf32>
    %94 = vector.extract_strided_slice %61 {offsets = [0, 0], sizes = [8, 2], strides = [1, 1]} : vector<8x4xf32> to vector<8x2xf32>
    %95 = tpu.concatenate %93, %94 in 1 : vector<8x2xf32>, vector<8x2xf32> -> vector<8x4xf32>
    %cst_32 = arith.constant 0.000000e+00 : f32
    %96 = vector.broadcast %cst_32 : f32 to vector<8x1xf32>
    %97 = vector.extract_strided_slice %61 {offsets = [0, 0], sizes = [8, 3], strides = [1, 1]} : vector<8x4xf32> to vector<8x3xf32>
    %98 = tpu.concatenate %96, %97 in 1 : vector<8x1xf32>, vector<8x3xf32> -> vector<8x4xf32>
    %cst_33 = arith.constant 0.000000e+00 : f32
    %99 = vector.shape_cast %85 : vector<1x4xi1> to vector<1x4xi1>
    %100 = vector.broadcast %99 : vector<1x4xi1> to vector<8x4xi1>
    %101 = vector.broadcast %cst_33 : f32 to vector<8x4xf32>
    %102 = arith.select %100, %98, %101 : vector<8x4xi1>, vector<8x4xf32>
    %cst_34 = arith.constant 0.000000e+00 : f32
    %103 = vector.broadcast %cst_34 : f32 to vector<8x1xf32>
    %104 = vector.extract_strided_slice %61 {offsets = [0, 0], sizes = [8, 3], strides = [1, 1]} : vector<8x4xf32> to vector<8x3xf32>
    %105 = tpu.concatenate %103, %104 in 1 : vector<8x1xf32>, vector<8x3xf32> -> vector<8x4xf32>
    %cst_35 = arith.constant 0.000000e+00 : f32
    %106 = vector.shape_cast %83 : vector<1x4xi1> to vector<1x4xi1>
    %107 = vector.broadcast %106 : vector<1x4xi1> to vector<8x4xi1>
    %108 = vector.broadcast %cst_35 : f32 to vector<8x4xf32>
    %109 = arith.select %107, %105, %108 : vector<8x4xi1>, vector<8x4xf32>
    %cst_36 = arith.constant 0.000000e+00 : f32
    %110 = vector.broadcast %cst_36 : f32 to vector<8x1xf32>
    %111 = vector.extract_strided_slice %61 {offsets = [0, 1], sizes = [8, 3], strides = [1, 1]} : vector<8x4xf32> to vector<8x3xf32>
    %112 = tpu.concatenate %111, %110 in 1 : vector<8x3xf32>, vector<8x1xf32> -> vector<8x4xf32>
    %cst_37 = arith.constant 0.000000e+00 : f32
    %113 = vector.shape_cast %85 : vector<1x4xi1> to vector<1x4xi1>
    %114 = vector.broadcast %113 : vector<1x4xi1> to vector<8x4xi1>
    %115 = vector.broadcast %cst_37 : f32 to vector<8x4xf32>
    %116 = arith.select %114, %112, %115 : vector<8x4xi1>, vector<8x4xf32>
    %cst_38 = arith.constant 0.000000e+00 : f32
    %117 = vector.broadcast %cst_38 : f32 to vector<8x1xf32>
    %118 = vector.extract_strided_slice %61 {offsets = [0, 1], sizes = [8, 3], strides = [1, 1]} : vector<8x4xf32> to vector<8x3xf32>
    %119 = tpu.concatenate %118, %117 in 1 : vector<8x3xf32>, vector<8x1xf32> -> vector<8x4xf32>
    %cst_39 = arith.constant 0.000000e+00 : f32
    %120 = vector.shape_cast %83 : vector<1x4xi1> to vector<1x4xi1>
    %121 = vector.broadcast %120 : vector<1x4xi1> to vector<8x4xi1>
    %122 = vector.broadcast %cst_39 : f32 to vector<8x4xf32>
    %123 = arith.select %121, %119, %122 : vector<8x4xi1>, vector<8x4xf32>
    %cst_40 = arith.constant 0.000000e+00 : f32
    %124 = vector.broadcast %cst_40 : f32 to vector<8x2xf32>
    %125 = vector.extract_strided_slice %61 {offsets = [0, 2], sizes = [8, 2], strides = [1, 1]} : vector<8x4xf32> to vector<8x2xf32>
    %126 = tpu.concatenate %125, %124 in 1 : vector<8x2xf32>, vector<8x2xf32> -> vector<8x4xf32>
    %cst_41 = arith.constant 0.000000e+00 : f32
    %127 = vector.broadcast %cst_41 : f32 to vector<8x3xf32>
    %128 = vector.extract_strided_slice %61 {offsets = [0, 3], sizes = [8, 1], strides = [1, 1]} : vector<8x4xf32> to vector<8x1xf32>
    %129 = tpu.concatenate %128, %127 in 1 : vector<8x1xf32>, vector<8x3xf32> -> vector<8x4xf32>
    %cst_42 = arith.constant 0.000000e+00 : f32
    %130 = vector.shape_cast %85 : vector<1x4xi1> to vector<1x4xi1>
    %131 = vector.broadcast %130 : vector<1x4xi1> to vector<8x4xi1>
    %132 = vector.broadcast %cst_42 : f32 to vector<8x4xf32>
    %133 = arith.select %131, %129, %132 : vector<8x4xi1>, vector<8x4xf32>
    %cst_43 = arith.constant 0.000000e+00 : f32
    %134 = vector.broadcast %cst_43 : f32 to vector<8x4xf32>
    %c0_44 = arith.constant 0 : index
    %c0_45 = arith.constant 0 : index
    %135 = vector.load %arg5[%c0_44, %c0_45] : memref<8x1xf32, #tpu.memory_space<vmem>>, vector<8x1xf32>
    %136 = vector.broadcast %135 : vector<8x1xf32> to vector<8x4xf32>
    %137 = arith.addf %134, %136 : vector<8x4xf32>
    %c0_46 = arith.constant 0 : index
    %c0_47 = arith.constant 0 : index
    %c0_48 = arith.constant 0 : index
    %138 = vector.load %arg4[%c0_46, %c0_47, %c0_48] : memref<72x8x1xf32, #tpu.memory_space<vmem>>, vector<1x8x1xf32>
    %139 = vector.shape_cast %138 : vector<1x8x1xf32> to vector<8x1xf32>
    %140 = vector.extract_strided_slice %92 {offsets = [0, 0], sizes = [1, 4], strides = [1, 1]} : vector<8x4xf32> to vector<1x4xf32>
    %141 = vector.broadcast %139 : vector<8x1xf32> to vector<8x4xf32>
    %142 = vector.broadcast %140 : vector<1x4xf32> to vector<8x4xf32>
    %143 = arith.mulf %141, %142 : vector<8x4xf32>
    %144 = arith.addf %137, %143 : vector<8x4xf32>
    %c1_49 = arith.constant 1 : index
    %c0_50 = arith.constant 0 : index
    %c0_51 = arith.constant 0 : index
    %145 = vector.load %arg4[%c1_49, %c0_50, %c0_51] : memref<72x8x1xf32, #tpu.memory_space<vmem>>, vector<1x8x1xf32>
    %146 = vector.shape_cast %145 : vector<1x8x1xf32> to vector<8x1xf32>
    %147 = vector.extract_strided_slice %92 {offsets = [1, 0], sizes = [1, 4], strides = [1, 1]} : vector<8x4xf32> to vector<1x4xf32>
    %148 = vector.broadcast %146 : vector<8x1xf32> to vector<8x4xf32>
    %149 = vector.broadcast %147 : vector<1x4xf32> to vector<8x4xf32>
    %150 = arith.mulf %148, %149 : vector<8x4xf32>
    %151 = arith.addf %144, %150 : vector<8x4xf32>
    %c2_52 = arith.constant 2 : index
    %c0_53 = arith.constant 0 : index
    %c0_54 = arith.constant 0 : index
    %152 = vector.load %arg4[%c2_52, %c0_53, %c0_54] : memref<72x8x1xf32, #tpu.memory_space<vmem>>, vector<1x8x1xf32>
    %153 = vector.shape_cast %152 : vector<1x8x1xf32> to vector<8x1xf32>
    %154 = vector.extract_strided_slice %92 {offsets = [2, 0], sizes = [1, 4], strides = [1, 1]} : vector<8x4xf32> to vector<1x4xf32>
    %155 = vector.broadcast %153 : vector<8x1xf32> to vector<8x4xf32>
    %156 = vector.broadcast %154 : vector<1x4xf32> to vector<8x4xf32>
    %157 = arith.mulf %155, %156 : vector<8x4xf32>
    %158 = arith.addf %151, %157 : vector<8x4xf32>
    %c3_55 = arith.constant 3 : index
    %c0_56 = arith.constant 0 : index
    %c0_57 = arith.constant 0 : index
    %159 = vector.load %arg4[%c3_55, %c0_56, %c0_57] : memref<72x8x1xf32, #tpu.memory_space<vmem>>, vector<1x8x1xf32>
    %160 = vector.shape_cast %159 : vector<1x8x1xf32> to vector<8x1xf32>
    %161 = vector.extract_strided_slice %92 {offsets = [3, 0], sizes = [1, 4], strides = [1, 1]} : vector<8x4xf32> to vector<1x4xf32>
    %162 = vector.broadcast %160 : vector<8x1xf32> to vector<8x4xf32>
    %163 = vector.broadcast %161 : vector<1x4xf32> to vector<8x4xf32>
    %164 = arith.mulf %162, %163 : vector<8x4xf32>
    %165 = arith.addf %158, %164 : vector<8x4xf32>
    %c4_58 = arith.constant 4 : index
    %c0_59 = arith.constant 0 : index
    %c0_60 = arith.constant 0 : index
    %166 = vector.load %arg4[%c4_58, %c0_59, %c0_60] : memref<72x8x1xf32, #tpu.memory_space<vmem>>, vector<1x8x1xf32>
    %167 = vector.shape_cast %166 : vector<1x8x1xf32> to vector<8x1xf32>
    %168 = vector.extract_strided_slice %92 {offsets = [4, 0], sizes = [1, 4], strides = [1, 1]} : vector<8x4xf32> to vector<1x4xf32>
    %169 = vector.broadcast %167 : vector<8x1xf32> to vector<8x4xf32>
    %170 = vector.broadcast %168 : vector<1x4xf32> to vector<8x4xf32>
    %171 = arith.mulf %169, %170 : vector<8x4xf32>
    %172 = arith.addf %165, %171 : vector<8x4xf32>
    %c5_61 = arith.constant 5 : index
    %c0_62 = arith.constant 0 : index
    %c0_63 = arith.constant 0 : index
    %173 = vector.load %arg4[%c5_61, %c0_62, %c0_63] : memref<72x8x1xf32, #tpu.memory_space<vmem>>, vector<1x8x1xf32>
    %174 = vector.shape_cast %173 : vector<1x8x1xf32> to vector<8x1xf32>
    %175 = vector.extract_strided_slice %92 {offsets = [5, 0], sizes = [1, 4], strides = [1, 1]} : vector<8x4xf32> to vector<1x4xf32>
    %176 = vector.broadcast %174 : vector<8x1xf32> to vector<8x4xf32>
    %177 = vector.broadcast %175 : vector<1x4xf32> to vector<8x4xf32>
    %178 = arith.mulf %176, %177 : vector<8x4xf32>
    %179 = arith.addf %172, %178 : vector<8x4xf32>
    %c6_64 = arith.constant 6 : index
    %c0_65 = arith.constant 0 : index
    %c0_66 = arith.constant 0 : index
    %180 = vector.load %arg4[%c6_64, %c0_65, %c0_66] : memref<72x8x1xf32, #tpu.memory_space<vmem>>, vector<1x8x1xf32>
    %181 = vector.shape_cast %180 : vector<1x8x1xf32> to vector<8x1xf32>
    %182 = vector.extract_strided_slice %92 {offsets = [6, 0], sizes = [1, 4], strides = [1, 1]} : vector<8x4xf32> to vector<1x4xf32>
    %183 = vector.broadcast %181 : vector<8x1xf32> to vector<8x4xf32>
    %184 = vector.broadcast %182 : vector<1x4xf32> to vector<8x4xf32>
    %185 = arith.mulf %183, %184 : vector<8x4xf32>
    %186 = arith.addf %179, %185 : vector<8x4xf32>
    %c7_67 = arith.constant 7 : index
    %c0_68 = arith.constant 0 : index
    %c0_69 = arith.constant 0 : index
    %187 = vector.load %arg4[%c7_67, %c0_68, %c0_69] : memref<72x8x1xf32, #tpu.memory_space<vmem>>, vector<1x8x1xf32>
    %188 = vector.shape_cast %187 : vector<1x8x1xf32> to vector<8x1xf32>
    %189 = vector.extract_strided_slice %92 {offsets = [7, 0], sizes = [1, 4], strides = [1, 1]} : vector<8x4xf32> to vector<1x4xf32>
    %190 = vector.broadcast %188 : vector<8x1xf32> to vector<8x4xf32>
    %191 = vector.broadcast %189 : vector<1x4xf32> to vector<8x4xf32>
    %192 = arith.mulf %190, %191 : vector<8x4xf32>
    %193 = arith.addf %186, %192 : vector<8x4xf32>
    %c8 = arith.constant 8 : index
    %c0_70 = arith.constant 0 : index
    %c0_71 = arith.constant 0 : index
    %194 = vector.load %arg4[%c8, %c0_70, %c0_71] : memref<72x8x1xf32, #tpu.memory_space<vmem>>, vector<1x8x1xf32>
    %195 = vector.shape_cast %194 : vector<1x8x1xf32> to vector<8x1xf32>
    %196 = vector.extract_strided_slice %95 {offsets = [0, 0], sizes = [1, 4], strides = [1, 1]} : vector<8x4xf32> to vector<1x4xf32>
    %197 = vector.broadcast %195 : vector<8x1xf32> to vector<8x4xf32>
    %198 = vector.broadcast %196 : vector<1x4xf32> to vector<8x4xf32>
    %199 = arith.mulf %197, %198 : vector<8x4xf32>
    %200 = arith.addf %193, %199 : vector<8x4xf32>
    %c9 = arith.constant 9 : index
    %c0_72 = arith.constant 0 : index
    %c0_73 = arith.constant 0 : index
    %201 = vector.load %arg4[%c9, %c0_72, %c0_73] : memref<72x8x1xf32, #tpu.memory_space<vmem>>, vector<1x8x1xf32>
    %202 = vector.shape_cast %201 : vector<1x8x1xf32> to vector<8x1xf32>
    %203 = vector.extract_strided_slice %95 {offsets = [1, 0], sizes = [1, 4], strides = [1, 1]} : vector<8x4xf32> to vector<1x4xf32>
    %204 = vector.broadcast %202 : vector<8x1xf32> to vector<8x4xf32>
    %205 = vector.broadcast %203 : vector<1x4xf32> to vector<8x4xf32>
    %206 = arith.mulf %204, %205 : vector<8x4xf32>
    %207 = arith.addf %200, %206 : vector<8x4xf32>
    %c10 = arith.constant 10 : index
    %c0_74 = arith.constant 0 : index
    %c0_75 = arith.constant 0 : index
    %208 = vector.load %arg4[%c10, %c0_74, %c0_75] : memref<72x8x1xf32, #tpu.memory_space<vmem>>, vector<1x8x1xf32>
    %209 = vector.shape_cast %208 : vector<1x8x1xf32> to vector<8x1xf32>
    %210 = vector.extract_strided_slice %95 {offsets = [2, 0], sizes = [1, 4], strides = [1, 1]} : vector<8x4xf32> to vector<1x4xf32>
    %211 = vector.broadcast %209 : vector<8x1xf32> to vector<8x4xf32>
    %212 = vector.broadcast %210 : vector<1x4xf32> to vector<8x4xf32>
    %213 = arith.mulf %211, %212 : vector<8x4xf32>
    %214 = arith.addf %207, %213 : vector<8x4xf32>
    %c11 = arith.constant 11 : index
    %c0_76 = arith.constant 0 : index
    %c0_77 = arith.constant 0 : index
    %215 = vector.load %arg4[%c11, %c0_76, %c0_77] : memref<72x8x1xf32, #tpu.memory_space<vmem>>, vector<1x8x1xf32>
    %216 = vector.shape_cast %215 : vector<1x8x1xf32> to vector<8x1xf32>
    %217 = vector.extract_strided_slice %95 {offsets = [3, 0], sizes = [1, 4], strides = [1, 1]} : vector<8x4xf32> to vector<1x4xf32>
    %218 = vector.broadcast %216 : vector<8x1xf32> to vector<8x4xf32>
    %219 = vector.broadcast %217 : vector<1x4xf32> to vector<8x4xf32>
    %220 = arith.mulf %218, %219 : vector<8x4xf32>
    %221 = arith.addf %214, %220 : vector<8x4xf32>
    %c12 = arith.constant 12 : index
    %c0_78 = arith.constant 0 : index
    %c0_79 = arith.constant 0 : index
    %222 = vector.load %arg4[%c12, %c0_78, %c0_79] : memref<72x8x1xf32, #tpu.memory_space<vmem>>, vector<1x8x1xf32>
    %223 = vector.shape_cast %222 : vector<1x8x1xf32> to vector<8x1xf32>
    %224 = vector.extract_strided_slice %95 {offsets = [4, 0], sizes = [1, 4], strides = [1, 1]} : vector<8x4xf32> to vector<1x4xf32>
    %225 = vector.broadcast %223 : vector<8x1xf32> to vector<8x4xf32>
    %226 = vector.broadcast %224 : vector<1x4xf32> to vector<8x4xf32>
    %227 = arith.mulf %225, %226 : vector<8x4xf32>
    %228 = arith.addf %221, %227 : vector<8x4xf32>
    %c13 = arith.constant 13 : index
    %c0_80 = arith.constant 0 : index
    %c0_81 = arith.constant 0 : index
    %229 = vector.load %arg4[%c13, %c0_80, %c0_81] : memref<72x8x1xf32, #tpu.memory_space<vmem>>, vector<1x8x1xf32>
    %230 = vector.shape_cast %229 : vector<1x8x1xf32> to vector<8x1xf32>
    %231 = vector.extract_strided_slice %95 {offsets = [5, 0], sizes = [1, 4], strides = [1, 1]} : vector<8x4xf32> to vector<1x4xf32>
    %232 = vector.broadcast %230 : vector<8x1xf32> to vector<8x4xf32>
    %233 = vector.broadcast %231 : vector<1x4xf32> to vector<8x4xf32>
    %234 = arith.mulf %232, %233 : vector<8x4xf32>
    %235 = arith.addf %228, %234 : vector<8x4xf32>
    %c14 = arith.constant 14 : index
    %c0_82 = arith.constant 0 : index
    %c0_83 = arith.constant 0 : index
    %236 = vector.load %arg4[%c14, %c0_82, %c0_83] : memref<72x8x1xf32, #tpu.memory_space<vmem>>, vector<1x8x1xf32>
    %237 = vector.shape_cast %236 : vector<1x8x1xf32> to vector<8x1xf32>
    %238 = vector.extract_strided_slice %95 {offsets = [6, 0], sizes = [1, 4], strides = [1, 1]} : vector<8x4xf32> to vector<1x4xf32>
    %239 = vector.broadcast %237 : vector<8x1xf32> to vector<8x4xf32>
    %240 = vector.broadcast %238 : vector<1x4xf32> to vector<8x4xf32>
    %241 = arith.mulf %239, %240 : vector<8x4xf32>
    %242 = arith.addf %235, %241 : vector<8x4xf32>
    %c15 = arith.constant 15 : index
    %c0_84 = arith.constant 0 : index
    %c0_85 = arith.constant 0 : index
    %243 = vector.load %arg4[%c15, %c0_84, %c0_85] : memref<72x8x1xf32, #tpu.memory_space<vmem>>, vector<1x8x1xf32>
    %244 = vector.shape_cast %243 : vector<1x8x1xf32> to vector<8x1xf32>
    %245 = vector.extract_strided_slice %95 {offsets = [7, 0], sizes = [1, 4], strides = [1, 1]} : vector<8x4xf32> to vector<1x4xf32>
    %246 = vector.broadcast %244 : vector<8x1xf32> to vector<8x4xf32>
    %247 = vector.broadcast %245 : vector<1x4xf32> to vector<8x4xf32>
    %248 = arith.mulf %246, %247 : vector<8x4xf32>
    %249 = arith.addf %242, %248 : vector<8x4xf32>
    %c16 = arith.constant 16 : index
    %c0_86 = arith.constant 0 : index
    %c0_87 = arith.constant 0 : index
    %250 = vector.load %arg4[%c16, %c0_86, %c0_87] : memref<72x8x1xf32, #tpu.memory_space<vmem>>, vector<1x8x1xf32>
    %251 = vector.shape_cast %250 : vector<1x8x1xf32> to vector<8x1xf32>
    %252 = vector.extract_strided_slice %102 {offsets = [0, 0], sizes = [1, 4], strides = [1, 1]} : vector<8x4xf32> to vector<1x4xf32>
    %253 = vector.broadcast %251 : vector<8x1xf32> to vector<8x4xf32>
    %254 = vector.broadcast %252 : vector<1x4xf32> to vector<8x4xf32>
    %255 = arith.mulf %253, %254 : vector<8x4xf32>
    %256 = arith.addf %249, %255 : vector<8x4xf32>
    %c17 = arith.constant 17 : index
    %c0_88 = arith.constant 0 : index
    %c0_89 = arith.constant 0 : index
    %257 = vector.load %arg4[%c17, %c0_88, %c0_89] : memref<72x8x1xf32, #tpu.memory_space<vmem>>, vector<1x8x1xf32>
    %258 = vector.shape_cast %257 : vector<1x8x1xf32> to vector<8x1xf32>
    %259 = vector.extract_strided_slice %102 {offsets = [1, 0], sizes = [1, 4], strides = [1, 1]} : vector<8x4xf32> to vector<1x4xf32>
    %260 = vector.broadcast %258 : vector<8x1xf32> to vector<8x4xf32>
    %261 = vector.broadcast %259 : vector<1x4xf32> to vector<8x4xf32>
    %262 = arith.mulf %260, %261 : vector<8x4xf32>
    %263 = arith.addf %256, %262 : vector<8x4xf32>
    %c18 = arith.constant 18 : index
    %c0_90 = arith.constant 0 : index
    %c0_91 = arith.constant 0 : index
    %264 = vector.load %arg4[%c18, %c0_90, %c0_91] : memref<72x8x1xf32, #tpu.memory_space<vmem>>, vector<1x8x1xf32>
    %265 = vector.shape_cast %264 : vector<1x8x1xf32> to vector<8x1xf32>
    %266 = vector.extract_strided_slice %102 {offsets = [2, 0], sizes = [1, 4], strides = [1, 1]} : vector<8x4xf32> to vector<1x4xf32>
    %267 = vector.broadcast %265 : vector<8x1xf32> to vector<8x4xf32>
    %268 = vector.broadcast %266 : vector<1x4xf32> to vector<8x4xf32>
    %269 = arith.mulf %267, %268 : vector<8x4xf32>
    %270 = arith.addf %263, %269 : vector<8x4xf32>
    %c19 = arith.constant 19 : index
    %c0_92 = arith.constant 0 : index
    %c0_93 = arith.constant 0 : index
    %271 = vector.load %arg4[%c19, %c0_92, %c0_93] : memref<72x8x1xf32, #tpu.memory_space<vmem>>, vector<1x8x1xf32>
    %272 = vector.shape_cast %271 : vector<1x8x1xf32> to vector<8x1xf32>
    %273 = vector.extract_strided_slice %102 {offsets = [3, 0], sizes = [1, 4], strides = [1, 1]} : vector<8x4xf32> to vector<1x4xf32>
    %274 = vector.broadcast %272 : vector<8x1xf32> to vector<8x4xf32>
    %275 = vector.broadcast %273 : vector<1x4xf32> to vector<8x4xf32>
    %276 = arith.mulf %274, %275 : vector<8x4xf32>
    %277 = arith.addf %270, %276 : vector<8x4xf32>
    %c20 = arith.constant 20 : index
    %c0_94 = arith.constant 0 : index
    %c0_95 = arith.constant 0 : index
    %278 = vector.load %arg4[%c20, %c0_94, %c0_95] : memref<72x8x1xf32, #tpu.memory_space<vmem>>, vector<1x8x1xf32>
    %279 = vector.shape_cast %278 : vector<1x8x1xf32> to vector<8x1xf32>
    %280 = vector.extract_strided_slice %102 {offsets = [4, 0], sizes = [1, 4], strides = [1, 1]} : vector<8x4xf32> to vector<1x4xf32>
    %281 = vector.broadcast %279 : vector<8x1xf32> to vector<8x4xf32>
    %282 = vector.broadcast %280 : vector<1x4xf32> to vector<8x4xf32>
    %283 = arith.mulf %281, %282 : vector<8x4xf32>
    %284 = arith.addf %277, %283 : vector<8x4xf32>
    %c21 = arith.constant 21 : index
    %c0_96 = arith.constant 0 : index
    %c0_97 = arith.constant 0 : index
    %285 = vector.load %arg4[%c21, %c0_96, %c0_97] : memref<72x8x1xf32, #tpu.memory_space<vmem>>, vector<1x8x1xf32>
    %286 = vector.shape_cast %285 : vector<1x8x1xf32> to vector<8x1xf32>
    %287 = vector.extract_strided_slice %102 {offsets = [5, 0], sizes = [1, 4], strides = [1, 1]} : vector<8x4xf32> to vector<1x4xf32>
    %288 = vector.broadcast %286 : vector<8x1xf32> to vector<8x4xf32>
    %289 = vector.broadcast %287 : vector<1x4xf32> to vector<8x4xf32>
    %290 = arith.mulf %288, %289 : vector<8x4xf32>
    %291 = arith.addf %284, %290 : vector<8x4xf32>
    %c22 = arith.constant 22 : index
    %c0_98 = arith.constant 0 : index
    %c0_99 = arith.constant 0 : index
    %292 = vector.load %arg4[%c22, %c0_98, %c0_99] : memref<72x8x1xf32, #tpu.memory_space<vmem>>, vector<1x8x1xf32>
    %293 = vector.shape_cast %292 : vector<1x8x1xf32> to vector<8x1xf32>
    %294 = vector.extract_strided_slice %102 {offsets = [6, 0], sizes = [1, 4], strides = [1, 1]} : vector<8x4xf32> to vector<1x4xf32>
    %295 = vector.broadcast %293 : vector<8x1xf32> to vector<8x4xf32>
    %296 = vector.broadcast %294 : vector<1x4xf32> to vector<8x4xf32>
    %297 = arith.mulf %295, %296 : vector<8x4xf32>
    %298 = arith.addf %291, %297 : vector<8x4xf32>
    %c23 = arith.constant 23 : index
    %c0_100 = arith.constant 0 : index
    %c0_101 = arith.constant 0 : index
    %299 = vector.load %arg4[%c23, %c0_100, %c0_101] : memref<72x8x1xf32, #tpu.memory_space<vmem>>, vector<1x8x1xf32>
    %300 = vector.shape_cast %299 : vector<1x8x1xf32> to vector<8x1xf32>
    %301 = vector.extract_strided_slice %102 {offsets = [7, 0], sizes = [1, 4], strides = [1, 1]} : vector<8x4xf32> to vector<1x4xf32>
    %302 = vector.broadcast %300 : vector<8x1xf32> to vector<8x4xf32>
    %303 = vector.broadcast %301 : vector<1x4xf32> to vector<8x4xf32>
    %304 = arith.mulf %302, %303 : vector<8x4xf32>
    %305 = arith.addf %298, %304 : vector<8x4xf32>
    %c24 = arith.constant 24 : index
    %c0_102 = arith.constant 0 : index
    %c0_103 = arith.constant 0 : index
    %306 = vector.load %arg4[%c24, %c0_102, %c0_103] : memref<72x8x1xf32, #tpu.memory_space<vmem>>, vector<1x8x1xf32>
    %307 = vector.shape_cast %306 : vector<1x8x1xf32> to vector<8x1xf32>
    %308 = vector.extract_strided_slice %109 {offsets = [0, 0], sizes = [1, 4], strides = [1, 1]} : vector<8x4xf32> to vector<1x4xf32>
    %309 = vector.broadcast %307 : vector<8x1xf32> to vector<8x4xf32>
    %310 = vector.broadcast %308 : vector<1x4xf32> to vector<8x4xf32>
    %311 = arith.mulf %309, %310 : vector<8x4xf32>
    %312 = arith.addf %305, %311 : vector<8x4xf32>
    %c25 = arith.constant 25 : index
    %c0_104 = arith.constant 0 : index
    %c0_105 = arith.constant 0 : index
    %313 = vector.load %arg4[%c25, %c0_104, %c0_105] : memref<72x8x1xf32, #tpu.memory_space<vmem>>, vector<1x8x1xf32>
    %314 = vector.shape_cast %313 : vector<1x8x1xf32> to vector<8x1xf32>
    %315 = vector.extract_strided_slice %109 {offsets = [1, 0], sizes = [1, 4], strides = [1, 1]} : vector<8x4xf32> to vector<1x4xf32>
    %316 = vector.broadcast %314 : vector<8x1xf32> to vector<8x4xf32>
    %317 = vector.broadcast %315 : vector<1x4xf32> to vector<8x4xf32>
    %318 = arith.mulf %316, %317 : vector<8x4xf32>
    %319 = arith.addf %312, %318 : vector<8x4xf32>
    %c26 = arith.constant 26 : index
    %c0_106 = arith.constant 0 : index
    %c0_107 = arith.constant 0 : index
    %320 = vector.load %arg4[%c26, %c0_106, %c0_107] : memref<72x8x1xf32, #tpu.memory_space<vmem>>, vector<1x8x1xf32>
    %321 = vector.shape_cast %320 : vector<1x8x1xf32> to vector<8x1xf32>
    %322 = vector.extract_strided_slice %109 {offsets = [2, 0], sizes = [1, 4], strides = [1, 1]} : vector<8x4xf32> to vector<1x4xf32>
    %323 = vector.broadcast %321 : vector<8x1xf32> to vector<8x4xf32>
    %324 = vector.broadcast %322 : vector<1x4xf32> to vector<8x4xf32>
    %325 = arith.mulf %323, %324 : vector<8x4xf32>
    %326 = arith.addf %319, %325 : vector<8x4xf32>
    %c27 = arith.constant 27 : index
    %c0_108 = arith.constant 0 : index
    %c0_109 = arith.constant 0 : index
    %327 = vector.load %arg4[%c27, %c0_108, %c0_109] : memref<72x8x1xf32, #tpu.memory_space<vmem>>, vector<1x8x1xf32>
    %328 = vector.shape_cast %327 : vector<1x8x1xf32> to vector<8x1xf32>
    %329 = vector.extract_strided_slice %109 {offsets = [3, 0], sizes = [1, 4], strides = [1, 1]} : vector<8x4xf32> to vector<1x4xf32>
    %330 = vector.broadcast %328 : vector<8x1xf32> to vector<8x4xf32>
    %331 = vector.broadcast %329 : vector<1x4xf32> to vector<8x4xf32>
    %332 = arith.mulf %330, %331 : vector<8x4xf32>
    %333 = arith.addf %326, %332 : vector<8x4xf32>
    %c28 = arith.constant 28 : index
    %c0_110 = arith.constant 0 : index
    %c0_111 = arith.constant 0 : index
    %334 = vector.load %arg4[%c28, %c0_110, %c0_111] : memref<72x8x1xf32, #tpu.memory_space<vmem>>, vector<1x8x1xf32>
    %335 = vector.shape_cast %334 : vector<1x8x1xf32> to vector<8x1xf32>
    %336 = vector.extract_strided_slice %109 {offsets = [4, 0], sizes = [1, 4], strides = [1, 1]} : vector<8x4xf32> to vector<1x4xf32>
    %337 = vector.broadcast %335 : vector<8x1xf32> to vector<8x4xf32>
    %338 = vector.broadcast %336 : vector<1x4xf32> to vector<8x4xf32>
    %339 = arith.mulf %337, %338 : vector<8x4xf32>
    %340 = arith.addf %333, %339 : vector<8x4xf32>
    %c29 = arith.constant 29 : index
    %c0_112 = arith.constant 0 : index
    %c0_113 = arith.constant 0 : index
    %341 = vector.load %arg4[%c29, %c0_112, %c0_113] : memref<72x8x1xf32, #tpu.memory_space<vmem>>, vector<1x8x1xf32>
    %342 = vector.shape_cast %341 : vector<1x8x1xf32> to vector<8x1xf32>
    %343 = vector.extract_strided_slice %109 {offsets = [5, 0], sizes = [1, 4], strides = [1, 1]} : vector<8x4xf32> to vector<1x4xf32>
    %344 = vector.broadcast %342 : vector<8x1xf32> to vector<8x4xf32>
    %345 = vector.broadcast %343 : vector<1x4xf32> to vector<8x4xf32>
    %346 = arith.mulf %344, %345 : vector<8x4xf32>
    %347 = arith.addf %340, %346 : vector<8x4xf32>
    %c30 = arith.constant 30 : index
    %c0_114 = arith.constant 0 : index
    %c0_115 = arith.constant 0 : index
    %348 = vector.load %arg4[%c30, %c0_114, %c0_115] : memref<72x8x1xf32, #tpu.memory_space<vmem>>, vector<1x8x1xf32>
    %349 = vector.shape_cast %348 : vector<1x8x1xf32> to vector<8x1xf32>
    %350 = vector.extract_strided_slice %109 {offsets = [6, 0], sizes = [1, 4], strides = [1, 1]} : vector<8x4xf32> to vector<1x4xf32>
    %351 = vector.broadcast %349 : vector<8x1xf32> to vector<8x4xf32>
    %352 = vector.broadcast %350 : vector<1x4xf32> to vector<8x4xf32>
    %353 = arith.mulf %351, %352 : vector<8x4xf32>
    %354 = arith.addf %347, %353 : vector<8x4xf32>
    %c31 = arith.constant 31 : index
    %c0_116 = arith.constant 0 : index
    %c0_117 = arith.constant 0 : index
    %355 = vector.load %arg4[%c31, %c0_116, %c0_117] : memref<72x8x1xf32, #tpu.memory_space<vmem>>, vector<1x8x1xf32>
    %356 = vector.shape_cast %355 : vector<1x8x1xf32> to vector<8x1xf32>
    %357 = vector.extract_strided_slice %109 {offsets = [7, 0], sizes = [1, 4], strides = [1, 1]} : vector<8x4xf32> to vector<1x4xf32>
    %358 = vector.broadcast %356 : vector<8x1xf32> to vector<8x4xf32>
    %359 = vector.broadcast %357 : vector<1x4xf32> to vector<8x4xf32>
    %360 = arith.mulf %358, %359 : vector<8x4xf32>
    %361 = arith.addf %354, %360 : vector<8x4xf32>
    %c32 = arith.constant 32 : index
    %c0_118 = arith.constant 0 : index
    %c0_119 = arith.constant 0 : index
    %362 = vector.load %arg4[%c32, %c0_118, %c0_119] : memref<72x8x1xf32, #tpu.memory_space<vmem>>, vector<1x8x1xf32>
    %363 = vector.shape_cast %362 : vector<1x8x1xf32> to vector<8x1xf32>
    %364 = vector.extract_strided_slice %61 {offsets = [0, 0], sizes = [1, 4], strides = [1, 1]} : vector<8x4xf32> to vector<1x4xf32>
    %365 = vector.broadcast %363 : vector<8x1xf32> to vector<8x4xf32>
    %366 = vector.broadcast %364 : vector<1x4xf32> to vector<8x4xf32>
    %367 = arith.mulf %365, %366 : vector<8x4xf32>
    %368 = arith.addf %361, %367 : vector<8x4xf32>
    %c33 = arith.constant 33 : index
    %c0_120 = arith.constant 0 : index
    %c0_121 = arith.constant 0 : index
    %369 = vector.load %arg4[%c33, %c0_120, %c0_121] : memref<72x8x1xf32, #tpu.memory_space<vmem>>, vector<1x8x1xf32>
    %370 = vector.shape_cast %369 : vector<1x8x1xf32> to vector<8x1xf32>
    %371 = vector.extract_strided_slice %61 {offsets = [1, 0], sizes = [1, 4], strides = [1, 1]} : vector<8x4xf32> to vector<1x4xf32>
    %372 = vector.broadcast %370 : vector<8x1xf32> to vector<8x4xf32>
    %373 = vector.broadcast %371 : vector<1x4xf32> to vector<8x4xf32>
    %374 = arith.mulf %372, %373 : vector<8x4xf32>
    %375 = arith.addf %368, %374 : vector<8x4xf32>
    %c34 = arith.constant 34 : index
    %c0_122 = arith.constant 0 : index
    %c0_123 = arith.constant 0 : index
    %376 = vector.load %arg4[%c34, %c0_122, %c0_123] : memref<72x8x1xf32, #tpu.memory_space<vmem>>, vector<1x8x1xf32>
    %377 = vector.shape_cast %376 : vector<1x8x1xf32> to vector<8x1xf32>
    %378 = vector.extract_strided_slice %61 {offsets = [2, 0], sizes = [1, 4], strides = [1, 1]} : vector<8x4xf32> to vector<1x4xf32>
    %379 = vector.broadcast %377 : vector<8x1xf32> to vector<8x4xf32>
    %380 = vector.broadcast %378 : vector<1x4xf32> to vector<8x4xf32>
    %381 = arith.mulf %379, %380 : vector<8x4xf32>
    %382 = arith.addf %375, %381 : vector<8x4xf32>
    %c35 = arith.constant 35 : index
    %c0_124 = arith.constant 0 : index
    %c0_125 = arith.constant 0 : index
    %383 = vector.load %arg4[%c35, %c0_124, %c0_125] : memref<72x8x1xf32, #tpu.memory_space<vmem>>, vector<1x8x1xf32>
    %384 = vector.shape_cast %383 : vector<1x8x1xf32> to vector<8x1xf32>
    %385 = vector.extract_strided_slice %61 {offsets = [3, 0], sizes = [1, 4], strides = [1, 1]} : vector<8x4xf32> to vector<1x4xf32>
    %386 = vector.broadcast %384 : vector<8x1xf32> to vector<8x4xf32>
    %387 = vector.broadcast %385 : vector<1x4xf32> to vector<8x4xf32>
    %388 = arith.mulf %386, %387 : vector<8x4xf32>
    %389 = arith.addf %382, %388 : vector<8x4xf32>
    %c36 = arith.constant 36 : index
    %c0_126 = arith.constant 0 : index
    %c0_127 = arith.constant 0 : index
    %390 = vector.load %arg4[%c36, %c0_126, %c0_127] : memref<72x8x1xf32, #tpu.memory_space<vmem>>, vector<1x8x1xf32>
    %391 = vector.shape_cast %390 : vector<1x8x1xf32> to vector<8x1xf32>
    %392 = vector.extract_strided_slice %61 {offsets = [4, 0], sizes = [1, 4], strides = [1, 1]} : vector<8x4xf32> to vector<1x4xf32>
    %393 = vector.broadcast %391 : vector<8x1xf32> to vector<8x4xf32>
    %394 = vector.broadcast %392 : vector<1x4xf32> to vector<8x4xf32>
    %395 = arith.mulf %393, %394 : vector<8x4xf32>
    %396 = arith.addf %389, %395 : vector<8x4xf32>
    %c37 = arith.constant 37 : index
    %c0_128 = arith.constant 0 : index
    %c0_129 = arith.constant 0 : index
    %397 = vector.load %arg4[%c37, %c0_128, %c0_129] : memref<72x8x1xf32, #tpu.memory_space<vmem>>, vector<1x8x1xf32>
    %398 = vector.shape_cast %397 : vector<1x8x1xf32> to vector<8x1xf32>
    %399 = vector.extract_strided_slice %61 {offsets = [5, 0], sizes = [1, 4], strides = [1, 1]} : vector<8x4xf32> to vector<1x4xf32>
    %400 = vector.broadcast %398 : vector<8x1xf32> to vector<8x4xf32>
    %401 = vector.broadcast %399 : vector<1x4xf32> to vector<8x4xf32>
    %402 = arith.mulf %400, %401 : vector<8x4xf32>
    %403 = arith.addf %396, %402 : vector<8x4xf32>
    %c38 = arith.constant 38 : index
    %c0_130 = arith.constant 0 : index
    %c0_131 = arith.constant 0 : index
    %404 = vector.load %arg4[%c38, %c0_130, %c0_131] : memref<72x8x1xf32, #tpu.memory_space<vmem>>, vector<1x8x1xf32>
    %405 = vector.shape_cast %404 : vector<1x8x1xf32> to vector<8x1xf32>
    %406 = vector.extract_strided_slice %61 {offsets = [6, 0], sizes = [1, 4], strides = [1, 1]} : vector<8x4xf32> to vector<1x4xf32>
    %407 = vector.broadcast %405 : vector<8x1xf32> to vector<8x4xf32>
    %408 = vector.broadcast %406 : vector<1x4xf32> to vector<8x4xf32>
    %409 = arith.mulf %407, %408 : vector<8x4xf32>
    %410 = arith.addf %403, %409 : vector<8x4xf32>
    %c39 = arith.constant 39 : index
    %c0_132 = arith.constant 0 : index
    %c0_133 = arith.constant 0 : index
    %411 = vector.load %arg4[%c39, %c0_132, %c0_133] : memref<72x8x1xf32, #tpu.memory_space<vmem>>, vector<1x8x1xf32>
    %412 = vector.shape_cast %411 : vector<1x8x1xf32> to vector<8x1xf32>
    %413 = vector.extract_strided_slice %61 {offsets = [7, 0], sizes = [1, 4], strides = [1, 1]} : vector<8x4xf32> to vector<1x4xf32>
    %414 = vector.broadcast %412 : vector<8x1xf32> to vector<8x4xf32>
    %415 = vector.broadcast %413 : vector<1x4xf32> to vector<8x4xf32>
    %416 = arith.mulf %414, %415 : vector<8x4xf32>
    %417 = arith.addf %410, %416 : vector<8x4xf32>
    %c40 = arith.constant 40 : index
    %c0_134 = arith.constant 0 : index
    %c0_135 = arith.constant 0 : index
    %418 = vector.load %arg4[%c40, %c0_134, %c0_135] : memref<72x8x1xf32, #tpu.memory_space<vmem>>, vector<1x8x1xf32>
    %419 = vector.shape_cast %418 : vector<1x8x1xf32> to vector<8x1xf32>
    %420 = vector.extract_strided_slice %116 {offsets = [0, 0], sizes = [1, 4], strides = [1, 1]} : vector<8x4xf32> to vector<1x4xf32>
    %421 = vector.broadcast %419 : vector<8x1xf32> to vector<8x4xf32>
    %422 = vector.broadcast %420 : vector<1x4xf32> to vector<8x4xf32>
    %423 = arith.mulf %421, %422 : vector<8x4xf32>
    %424 = arith.addf %417, %423 : vector<8x4xf32>
    %c41 = arith.constant 41 : index
    %c0_136 = arith.constant 0 : index
    %c0_137 = arith.constant 0 : index
    %425 = vector.load %arg4[%c41, %c0_136, %c0_137] : memref<72x8x1xf32, #tpu.memory_space<vmem>>, vector<1x8x1xf32>
    %426 = vector.shape_cast %425 : vector<1x8x1xf32> to vector<8x1xf32>
    %427 = vector.extract_strided_slice %116 {offsets = [1, 0], sizes = [1, 4], strides = [1, 1]} : vector<8x4xf32> to vector<1x4xf32>
    %428 = vector.broadcast %426 : vector<8x1xf32> to vector<8x4xf32>
    %429 = vector.broadcast %427 : vector<1x4xf32> to vector<8x4xf32>
    %430 = arith.mulf %428, %429 : vector<8x4xf32>
    %431 = arith.addf %424, %430 : vector<8x4xf32>
    %c42 = arith.constant 42 : index
    %c0_138 = arith.constant 0 : index
    %c0_139 = arith.constant 0 : index
    %432 = vector.load %arg4[%c42, %c0_138, %c0_139] : memref<72x8x1xf32, #tpu.memory_space<vmem>>, vector<1x8x1xf32>
    %433 = vector.shape_cast %432 : vector<1x8x1xf32> to vector<8x1xf32>
    %434 = vector.extract_strided_slice %116 {offsets = [2, 0], sizes = [1, 4], strides = [1, 1]} : vector<8x4xf32> to vector<1x4xf32>
    %435 = vector.broadcast %433 : vector<8x1xf32> to vector<8x4xf32>
    %436 = vector.broadcast %434 : vector<1x4xf32> to vector<8x4xf32>
    %437 = arith.mulf %435, %436 : vector<8x4xf32>
    %438 = arith.addf %431, %437 : vector<8x4xf32>
    %c43 = arith.constant 43 : index
    %c0_140 = arith.constant 0 : index
    %c0_141 = arith.constant 0 : index
    %439 = vector.load %arg4[%c43, %c0_140, %c0_141] : memref<72x8x1xf32, #tpu.memory_space<vmem>>, vector<1x8x1xf32>
    %440 = vector.shape_cast %439 : vector<1x8x1xf32> to vector<8x1xf32>
    %441 = vector.extract_strided_slice %116 {offsets = [3, 0], sizes = [1, 4], strides = [1, 1]} : vector<8x4xf32> to vector<1x4xf32>
    %442 = vector.broadcast %440 : vector<8x1xf32> to vector<8x4xf32>
    %443 = vector.broadcast %441 : vector<1x4xf32> to vector<8x4xf32>
    %444 = arith.mulf %442, %443 : vector<8x4xf32>
    %445 = arith.addf %438, %444 : vector<8x4xf32>
    %c44 = arith.constant 44 : index
    %c0_142 = arith.constant 0 : index
    %c0_143 = arith.constant 0 : index
    %446 = vector.load %arg4[%c44, %c0_142, %c0_143] : memref<72x8x1xf32, #tpu.memory_space<vmem>>, vector<1x8x1xf32>
    %447 = vector.shape_cast %446 : vector<1x8x1xf32> to vector<8x1xf32>
    %448 = vector.extract_strided_slice %116 {offsets = [4, 0], sizes = [1, 4], strides = [1, 1]} : vector<8x4xf32> to vector<1x4xf32>
    %449 = vector.broadcast %447 : vector<8x1xf32> to vector<8x4xf32>
    %450 = vector.broadcast %448 : vector<1x4xf32> to vector<8x4xf32>
    %451 = arith.mulf %449, %450 : vector<8x4xf32>
    %452 = arith.addf %445, %451 : vector<8x4xf32>
    %c45 = arith.constant 45 : index
    %c0_144 = arith.constant 0 : index
    %c0_145 = arith.constant 0 : index
    %453 = vector.load %arg4[%c45, %c0_144, %c0_145] : memref<72x8x1xf32, #tpu.memory_space<vmem>>, vector<1x8x1xf32>
    %454 = vector.shape_cast %453 : vector<1x8x1xf32> to vector<8x1xf32>
    %455 = vector.extract_strided_slice %116 {offsets = [5, 0], sizes = [1, 4], strides = [1, 1]} : vector<8x4xf32> to vector<1x4xf32>
    %456 = vector.broadcast %454 : vector<8x1xf32> to vector<8x4xf32>
    %457 = vector.broadcast %455 : vector<1x4xf32> to vector<8x4xf32>
    %458 = arith.mulf %456, %457 : vector<8x4xf32>
    %459 = arith.addf %452, %458 : vector<8x4xf32>
    %c46 = arith.constant 46 : index
    %c0_146 = arith.constant 0 : index
    %c0_147 = arith.constant 0 : index
    %460 = vector.load %arg4[%c46, %c0_146, %c0_147] : memref<72x8x1xf32, #tpu.memory_space<vmem>>, vector<1x8x1xf32>
    %461 = vector.shape_cast %460 : vector<1x8x1xf32> to vector<8x1xf32>
    %462 = vector.extract_strided_slice %116 {offsets = [6, 0], sizes = [1, 4], strides = [1, 1]} : vector<8x4xf32> to vector<1x4xf32>
    %463 = vector.broadcast %461 : vector<8x1xf32> to vector<8x4xf32>
    %464 = vector.broadcast %462 : vector<1x4xf32> to vector<8x4xf32>
    %465 = arith.mulf %463, %464 : vector<8x4xf32>
    %466 = arith.addf %459, %465 : vector<8x4xf32>
    %c47 = arith.constant 47 : index
    %c0_148 = arith.constant 0 : index
    %c0_149 = arith.constant 0 : index
    %467 = vector.load %arg4[%c47, %c0_148, %c0_149] : memref<72x8x1xf32, #tpu.memory_space<vmem>>, vector<1x8x1xf32>
    %468 = vector.shape_cast %467 : vector<1x8x1xf32> to vector<8x1xf32>
    %469 = vector.extract_strided_slice %116 {offsets = [7, 0], sizes = [1, 4], strides = [1, 1]} : vector<8x4xf32> to vector<1x4xf32>
    %470 = vector.broadcast %468 : vector<8x1xf32> to vector<8x4xf32>
    %471 = vector.broadcast %469 : vector<1x4xf32> to vector<8x4xf32>
    %472 = arith.mulf %470, %471 : vector<8x4xf32>
    %473 = arith.addf %466, %472 : vector<8x4xf32>
    %c48 = arith.constant 48 : index
    %c0_150 = arith.constant 0 : index
    %c0_151 = arith.constant 0 : index
    %474 = vector.load %arg4[%c48, %c0_150, %c0_151] : memref<72x8x1xf32, #tpu.memory_space<vmem>>, vector<1x8x1xf32>
    %475 = vector.shape_cast %474 : vector<1x8x1xf32> to vector<8x1xf32>
    %476 = vector.extract_strided_slice %123 {offsets = [0, 0], sizes = [1, 4], strides = [1, 1]} : vector<8x4xf32> to vector<1x4xf32>
    %477 = vector.broadcast %475 : vector<8x1xf32> to vector<8x4xf32>
    %478 = vector.broadcast %476 : vector<1x4xf32> to vector<8x4xf32>
    %479 = arith.mulf %477, %478 : vector<8x4xf32>
    %480 = arith.addf %473, %479 : vector<8x4xf32>
    %c49 = arith.constant 49 : index
    %c0_152 = arith.constant 0 : index
    %c0_153 = arith.constant 0 : index
    %481 = vector.load %arg4[%c49, %c0_152, %c0_153] : memref<72x8x1xf32, #tpu.memory_space<vmem>>, vector<1x8x1xf32>
    %482 = vector.shape_cast %481 : vector<1x8x1xf32> to vector<8x1xf32>
    %483 = vector.extract_strided_slice %123 {offsets = [1, 0], sizes = [1, 4], strides = [1, 1]} : vector<8x4xf32> to vector<1x4xf32>
    %484 = vector.broadcast %482 : vector<8x1xf32> to vector<8x4xf32>
    %485 = vector.broadcast %483 : vector<1x4xf32> to vector<8x4xf32>
    %486 = arith.mulf %484, %485 : vector<8x4xf32>
    %487 = arith.addf %480, %486 : vector<8x4xf32>
    %c50 = arith.constant 50 : index
    %c0_154 = arith.constant 0 : index
    %c0_155 = arith.constant 0 : index
    %488 = vector.load %arg4[%c50, %c0_154, %c0_155] : memref<72x8x1xf32, #tpu.memory_space<vmem>>, vector<1x8x1xf32>
    %489 = vector.shape_cast %488 : vector<1x8x1xf32> to vector<8x1xf32>
    %490 = vector.extract_strided_slice %123 {offsets = [2, 0], sizes = [1, 4], strides = [1, 1]} : vector<8x4xf32> to vector<1x4xf32>
    %491 = vector.broadcast %489 : vector<8x1xf32> to vector<8x4xf32>
    %492 = vector.broadcast %490 : vector<1x4xf32> to vector<8x4xf32>
    %493 = arith.mulf %491, %492 : vector<8x4xf32>
    %494 = arith.addf %487, %493 : vector<8x4xf32>
    %c51 = arith.constant 51 : index
    %c0_156 = arith.constant 0 : index
    %c0_157 = arith.constant 0 : index
    %495 = vector.load %arg4[%c51, %c0_156, %c0_157] : memref<72x8x1xf32, #tpu.memory_space<vmem>>, vector<1x8x1xf32>
    %496 = vector.shape_cast %495 : vector<1x8x1xf32> to vector<8x1xf32>
    %497 = vector.extract_strided_slice %123 {offsets = [3, 0], sizes = [1, 4], strides = [1, 1]} : vector<8x4xf32> to vector<1x4xf32>
    %498 = vector.broadcast %496 : vector<8x1xf32> to vector<8x4xf32>
    %499 = vector.broadcast %497 : vector<1x4xf32> to vector<8x4xf32>
    %500 = arith.mulf %498, %499 : vector<8x4xf32>
    %501 = arith.addf %494, %500 : vector<8x4xf32>
    %c52 = arith.constant 52 : index
    %c0_158 = arith.constant 0 : index
    %c0_159 = arith.constant 0 : index
    %502 = vector.load %arg4[%c52, %c0_158, %c0_159] : memref<72x8x1xf32, #tpu.memory_space<vmem>>, vector<1x8x1xf32>
    %503 = vector.shape_cast %502 : vector<1x8x1xf32> to vector<8x1xf32>
    %504 = vector.extract_strided_slice %123 {offsets = [4, 0], sizes = [1, 4], strides = [1, 1]} : vector<8x4xf32> to vector<1x4xf32>
    %505 = vector.broadcast %503 : vector<8x1xf32> to vector<8x4xf32>
    %506 = vector.broadcast %504 : vector<1x4xf32> to vector<8x4xf32>
    %507 = arith.mulf %505, %506 : vector<8x4xf32>
    %508 = arith.addf %501, %507 : vector<8x4xf32>
    %c53 = arith.constant 53 : index
    %c0_160 = arith.constant 0 : index
    %c0_161 = arith.constant 0 : index
    %509 = vector.load %arg4[%c53, %c0_160, %c0_161] : memref<72x8x1xf32, #tpu.memory_space<vmem>>, vector<1x8x1xf32>
    %510 = vector.shape_cast %509 : vector<1x8x1xf32> to vector<8x1xf32>
    %511 = vector.extract_strided_slice %123 {offsets = [5, 0], sizes = [1, 4], strides = [1, 1]} : vector<8x4xf32> to vector<1x4xf32>
    %512 = vector.broadcast %510 : vector<8x1xf32> to vector<8x4xf32>
    %513 = vector.broadcast %511 : vector<1x4xf32> to vector<8x4xf32>
    %514 = arith.mulf %512, %513 : vector<8x4xf32>
    %515 = arith.addf %508, %514 : vector<8x4xf32>
    %c54 = arith.constant 54 : index
    %c0_162 = arith.constant 0 : index
    %c0_163 = arith.constant 0 : index
    %516 = vector.load %arg4[%c54, %c0_162, %c0_163] : memref<72x8x1xf32, #tpu.memory_space<vmem>>, vector<1x8x1xf32>
    %517 = vector.shape_cast %516 : vector<1x8x1xf32> to vector<8x1xf32>
    %518 = vector.extract_strided_slice %123 {offsets = [6, 0], sizes = [1, 4], strides = [1, 1]} : vector<8x4xf32> to vector<1x4xf32>
    %519 = vector.broadcast %517 : vector<8x1xf32> to vector<8x4xf32>
    %520 = vector.broadcast %518 : vector<1x4xf32> to vector<8x4xf32>
    %521 = arith.mulf %519, %520 : vector<8x4xf32>
    %522 = arith.addf %515, %521 : vector<8x4xf32>
    %c55 = arith.constant 55 : index
    %c0_164 = arith.constant 0 : index
    %c0_165 = arith.constant 0 : index
    %523 = vector.load %arg4[%c55, %c0_164, %c0_165] : memref<72x8x1xf32, #tpu.memory_space<vmem>>, vector<1x8x1xf32>
    %524 = vector.shape_cast %523 : vector<1x8x1xf32> to vector<8x1xf32>
    %525 = vector.extract_strided_slice %123 {offsets = [7, 0], sizes = [1, 4], strides = [1, 1]} : vector<8x4xf32> to vector<1x4xf32>
    %526 = vector.broadcast %524 : vector<8x1xf32> to vector<8x4xf32>
    %527 = vector.broadcast %525 : vector<1x4xf32> to vector<8x4xf32>
    %528 = arith.mulf %526, %527 : vector<8x4xf32>
    %529 = arith.addf %522, %528 : vector<8x4xf32>
    %c56 = arith.constant 56 : index
    %c0_166 = arith.constant 0 : index
    %c0_167 = arith.constant 0 : index
    %530 = vector.load %arg4[%c56, %c0_166, %c0_167] : memref<72x8x1xf32, #tpu.memory_space<vmem>>, vector<1x8x1xf32>
    %531 = vector.shape_cast %530 : vector<1x8x1xf32> to vector<8x1xf32>
    %532 = vector.extract_strided_slice %126 {offsets = [0, 0], sizes = [1, 4], strides = [1, 1]} : vector<8x4xf32> to vector<1x4xf32>
    %533 = vector.broadcast %531 : vector<8x1xf32> to vector<8x4xf32>
    %534 = vector.broadcast %532 : vector<1x4xf32> to vector<8x4xf32>
    %535 = arith.mulf %533, %534 : vector<8x4xf32>
    %536 = arith.addf %529, %535 : vector<8x4xf32>
    %c57 = arith.constant 57 : index
    %c0_168 = arith.constant 0 : index
    %c0_169 = arith.constant 0 : index
    %537 = vector.load %arg4[%c57, %c0_168, %c0_169] : memref<72x8x1xf32, #tpu.memory_space<vmem>>, vector<1x8x1xf32>
    %538 = vector.shape_cast %537 : vector<1x8x1xf32> to vector<8x1xf32>
    %539 = vector.extract_strided_slice %126 {offsets = [1, 0], sizes = [1, 4], strides = [1, 1]} : vector<8x4xf32> to vector<1x4xf32>
    %540 = vector.broadcast %538 : vector<8x1xf32> to vector<8x4xf32>
    %541 = vector.broadcast %539 : vector<1x4xf32> to vector<8x4xf32>
    %542 = arith.mulf %540, %541 : vector<8x4xf32>
    %543 = arith.addf %536, %542 : vector<8x4xf32>
    %c58 = arith.constant 58 : index
    %c0_170 = arith.constant 0 : index
    %c0_171 = arith.constant 0 : index
    %544 = vector.load %arg4[%c58, %c0_170, %c0_171] : memref<72x8x1xf32, #tpu.memory_space<vmem>>, vector<1x8x1xf32>
    %545 = vector.shape_cast %544 : vector<1x8x1xf32> to vector<8x1xf32>
    %546 = vector.extract_strided_slice %126 {offsets = [2, 0], sizes = [1, 4], strides = [1, 1]} : vector<8x4xf32> to vector<1x4xf32>
    %547 = vector.broadcast %545 : vector<8x1xf32> to vector<8x4xf32>
    %548 = vector.broadcast %546 : vector<1x4xf32> to vector<8x4xf32>
    %549 = arith.mulf %547, %548 : vector<8x4xf32>
    %550 = arith.addf %543, %549 : vector<8x4xf32>
    %c59 = arith.constant 59 : index
    %c0_172 = arith.constant 0 : index
    %c0_173 = arith.constant 0 : index
    %551 = vector.load %arg4[%c59, %c0_172, %c0_173] : memref<72x8x1xf32, #tpu.memory_space<vmem>>, vector<1x8x1xf32>
    %552 = vector.shape_cast %551 : vector<1x8x1xf32> to vector<8x1xf32>
    %553 = vector.extract_strided_slice %126 {offsets = [3, 0], sizes = [1, 4], strides = [1, 1]} : vector<8x4xf32> to vector<1x4xf32>
    %554 = vector.broadcast %552 : vector<8x1xf32> to vector<8x4xf32>
    %555 = vector.broadcast %553 : vector<1x4xf32> to vector<8x4xf32>
    %556 = arith.mulf %554, %555 : vector<8x4xf32>
    %557 = arith.addf %550, %556 : vector<8x4xf32>
    %c60 = arith.constant 60 : index
    %c0_174 = arith.constant 0 : index
    %c0_175 = arith.constant 0 : index
    %558 = vector.load %arg4[%c60, %c0_174, %c0_175] : memref<72x8x1xf32, #tpu.memory_space<vmem>>, vector<1x8x1xf32>
    %559 = vector.shape_cast %558 : vector<1x8x1xf32> to vector<8x1xf32>
    %560 = vector.extract_strided_slice %126 {offsets = [4, 0], sizes = [1, 4], strides = [1, 1]} : vector<8x4xf32> to vector<1x4xf32>
    %561 = vector.broadcast %559 : vector<8x1xf32> to vector<8x4xf32>
    %562 = vector.broadcast %560 : vector<1x4xf32> to vector<8x4xf32>
    %563 = arith.mulf %561, %562 : vector<8x4xf32>
    %564 = arith.addf %557, %563 : vector<8x4xf32>
    %c61 = arith.constant 61 : index
    %c0_176 = arith.constant 0 : index
    %c0_177 = arith.constant 0 : index
    %565 = vector.load %arg4[%c61, %c0_176, %c0_177] : memref<72x8x1xf32, #tpu.memory_space<vmem>>, vector<1x8x1xf32>
    %566 = vector.shape_cast %565 : vector<1x8x1xf32> to vector<8x1xf32>
    %567 = vector.extract_strided_slice %126 {offsets = [5, 0], sizes = [1, 4], strides = [1, 1]} : vector<8x4xf32> to vector<1x4xf32>
    %568 = vector.broadcast %566 : vector<8x1xf32> to vector<8x4xf32>
    %569 = vector.broadcast %567 : vector<1x4xf32> to vector<8x4xf32>
    %570 = arith.mulf %568, %569 : vector<8x4xf32>
    %571 = arith.addf %564, %570 : vector<8x4xf32>
    %c62 = arith.constant 62 : index
    %c0_178 = arith.constant 0 : index
    %c0_179 = arith.constant 0 : index
    %572 = vector.load %arg4[%c62, %c0_178, %c0_179] : memref<72x8x1xf32, #tpu.memory_space<vmem>>, vector<1x8x1xf32>
    %573 = vector.shape_cast %572 : vector<1x8x1xf32> to vector<8x1xf32>
    %574 = vector.extract_strided_slice %126 {offsets = [6, 0], sizes = [1, 4], strides = [1, 1]} : vector<8x4xf32> to vector<1x4xf32>
    %575 = vector.broadcast %573 : vector<8x1xf32> to vector<8x4xf32>
    %576 = vector.broadcast %574 : vector<1x4xf32> to vector<8x4xf32>
    %577 = arith.mulf %575, %576 : vector<8x4xf32>
    %578 = arith.addf %571, %577 : vector<8x4xf32>
    %c63 = arith.constant 63 : index
    %c0_180 = arith.constant 0 : index
    %c0_181 = arith.constant 0 : index
    %579 = vector.load %arg4[%c63, %c0_180, %c0_181] : memref<72x8x1xf32, #tpu.memory_space<vmem>>, vector<1x8x1xf32>
    %580 = vector.shape_cast %579 : vector<1x8x1xf32> to vector<8x1xf32>
    %581 = vector.extract_strided_slice %126 {offsets = [7, 0], sizes = [1, 4], strides = [1, 1]} : vector<8x4xf32> to vector<1x4xf32>
    %582 = vector.broadcast %580 : vector<8x1xf32> to vector<8x4xf32>
    %583 = vector.broadcast %581 : vector<1x4xf32> to vector<8x4xf32>
    %584 = arith.mulf %582, %583 : vector<8x4xf32>
    %585 = arith.addf %578, %584 : vector<8x4xf32>
    %c64 = arith.constant 64 : index
    %c0_182 = arith.constant 0 : index
    %c0_183 = arith.constant 0 : index
    %586 = vector.load %arg4[%c64, %c0_182, %c0_183] : memref<72x8x1xf32, #tpu.memory_space<vmem>>, vector<1x8x1xf32>
    %587 = vector.shape_cast %586 : vector<1x8x1xf32> to vector<8x1xf32>
    %588 = vector.extract_strided_slice %133 {offsets = [0, 0], sizes = [1, 4], strides = [1, 1]} : vector<8x4xf32> to vector<1x4xf32>
    %589 = vector.broadcast %587 : vector<8x1xf32> to vector<8x4xf32>
    %590 = vector.broadcast %588 : vector<1x4xf32> to vector<8x4xf32>
    %591 = arith.mulf %589, %590 : vector<8x4xf32>
    %592 = arith.addf %585, %591 : vector<8x4xf32>
    %c65 = arith.constant 65 : index
    %c0_184 = arith.constant 0 : index
    %c0_185 = arith.constant 0 : index
    %593 = vector.load %arg4[%c65, %c0_184, %c0_185] : memref<72x8x1xf32, #tpu.memory_space<vmem>>, vector<1x8x1xf32>
    %594 = vector.shape_cast %593 : vector<1x8x1xf32> to vector<8x1xf32>
    %595 = vector.extract_strided_slice %133 {offsets = [1, 0], sizes = [1, 4], strides = [1, 1]} : vector<8x4xf32> to vector<1x4xf32>
    %596 = vector.broadcast %594 : vector<8x1xf32> to vector<8x4xf32>
    %597 = vector.broadcast %595 : vector<1x4xf32> to vector<8x4xf32>
    %598 = arith.mulf %596, %597 : vector<8x4xf32>
    %599 = arith.addf %592, %598 : vector<8x4xf32>
    %c66 = arith.constant 66 : index
    %c0_186 = arith.constant 0 : index
    %c0_187 = arith.constant 0 : index
    %600 = vector.load %arg4[%c66, %c0_186, %c0_187] : memref<72x8x1xf32, #tpu.memory_space<vmem>>, vector<1x8x1xf32>
    %601 = vector.shape_cast %600 : vector<1x8x1xf32> to vector<8x1xf32>
    %602 = vector.extract_strided_slice %133 {offsets = [2, 0], sizes = [1, 4], strides = [1, 1]} : vector<8x4xf32> to vector<1x4xf32>
    %603 = vector.broadcast %601 : vector<8x1xf32> to vector<8x4xf32>
    %604 = vector.broadcast %602 : vector<1x4xf32> to vector<8x4xf32>
    %605 = arith.mulf %603, %604 : vector<8x4xf32>
    %606 = arith.addf %599, %605 : vector<8x4xf32>
    %c67 = arith.constant 67 : index
    %c0_188 = arith.constant 0 : index
    %c0_189 = arith.constant 0 : index
    %607 = vector.load %arg4[%c67, %c0_188, %c0_189] : memref<72x8x1xf32, #tpu.memory_space<vmem>>, vector<1x8x1xf32>
    %608 = vector.shape_cast %607 : vector<1x8x1xf32> to vector<8x1xf32>
    %609 = vector.extract_strided_slice %133 {offsets = [3, 0], sizes = [1, 4], strides = [1, 1]} : vector<8x4xf32> to vector<1x4xf32>
    %610 = vector.broadcast %608 : vector<8x1xf32> to vector<8x4xf32>
    %611 = vector.broadcast %609 : vector<1x4xf32> to vector<8x4xf32>
    %612 = arith.mulf %610, %611 : vector<8x4xf32>
    %613 = arith.addf %606, %612 : vector<8x4xf32>
    %c68 = arith.constant 68 : index
    %c0_190 = arith.constant 0 : index
    %c0_191 = arith.constant 0 : index
    %614 = vector.load %arg4[%c68, %c0_190, %c0_191] : memref<72x8x1xf32, #tpu.memory_space<vmem>>, vector<1x8x1xf32>
    %615 = vector.shape_cast %614 : vector<1x8x1xf32> to vector<8x1xf32>
    %616 = vector.extract_strided_slice %133 {offsets = [4, 0], sizes = [1, 4], strides = [1, 1]} : vector<8x4xf32> to vector<1x4xf32>
    %617 = vector.broadcast %615 : vector<8x1xf32> to vector<8x4xf32>
    %618 = vector.broadcast %616 : vector<1x4xf32> to vector<8x4xf32>
    %619 = arith.mulf %617, %618 : vector<8x4xf32>
    %620 = arith.addf %613, %619 : vector<8x4xf32>
    %c69 = arith.constant 69 : index
    %c0_192 = arith.constant 0 : index
    %c0_193 = arith.constant 0 : index
    %621 = vector.load %arg4[%c69, %c0_192, %c0_193] : memref<72x8x1xf32, #tpu.memory_space<vmem>>, vector<1x8x1xf32>
    %622 = vector.shape_cast %621 : vector<1x8x1xf32> to vector<8x1xf32>
    %623 = vector.extract_strided_slice %133 {offsets = [5, 0], sizes = [1, 4], strides = [1, 1]} : vector<8x4xf32> to vector<1x4xf32>
    %624 = vector.broadcast %622 : vector<8x1xf32> to vector<8x4xf32>
    %625 = vector.broadcast %623 : vector<1x4xf32> to vector<8x4xf32>
    %626 = arith.mulf %624, %625 : vector<8x4xf32>
    %627 = arith.addf %620, %626 : vector<8x4xf32>
    %c70 = arith.constant 70 : index
    %c0_194 = arith.constant 0 : index
    %c0_195 = arith.constant 0 : index
    %628 = vector.load %arg4[%c70, %c0_194, %c0_195] : memref<72x8x1xf32, #tpu.memory_space<vmem>>, vector<1x8x1xf32>
    %629 = vector.shape_cast %628 : vector<1x8x1xf32> to vector<8x1xf32>
    %630 = vector.extract_strided_slice %133 {offsets = [6, 0], sizes = [1, 4], strides = [1, 1]} : vector<8x4xf32> to vector<1x4xf32>
    %631 = vector.broadcast %629 : vector<8x1xf32> to vector<8x4xf32>
    %632 = vector.broadcast %630 : vector<1x4xf32> to vector<8x4xf32>
    %633 = arith.mulf %631, %632 : vector<8x4xf32>
    %634 = arith.addf %627, %633 : vector<8x4xf32>
    %c71 = arith.constant 71 : index
    %c0_196 = arith.constant 0 : index
    %c0_197 = arith.constant 0 : index
    %635 = vector.load %arg4[%c71, %c0_196, %c0_197] : memref<72x8x1xf32, #tpu.memory_space<vmem>>, vector<1x8x1xf32>
    %636 = vector.shape_cast %635 : vector<1x8x1xf32> to vector<8x1xf32>
    %637 = vector.extract_strided_slice %133 {offsets = [7, 0], sizes = [1, 4], strides = [1, 1]} : vector<8x4xf32> to vector<1x4xf32>
    %638 = vector.broadcast %636 : vector<8x1xf32> to vector<8x4xf32>
    %639 = vector.broadcast %637 : vector<1x4xf32> to vector<8x4xf32>
    %640 = arith.mulf %638, %639 : vector<8x4xf32>
    %641 = arith.addf %634, %640 : vector<8x4xf32>
    %c0_198 = arith.constant 0 : index
    %c0_199 = arith.constant 0 : index
    %c0_200 = arith.constant 0 : index
    %642 = vector.load %arg6[%c0_198, %c0_199, %c0_200] : memref<1x16x4xf32, #tpu.memory_space<vmem>>, vector<1x8x4xf32>
    %643 = vector.shape_cast %642 : vector<1x8x4xf32> to vector<8x4xf32>
    %644 = vector.shape_cast %641 : vector<8x4xf32> to vector<1x8x4xf32>
    tpu.vector_store %arg6[%c0_198, %c0_199, %c0_200], %644 {strides = array<i32>} : memref<1x16x4xf32, #tpu.memory_space<vmem>>, vector<1x8x4xf32>,
    %c0_201 = arith.constant 0 : index
    %c8_202 = arith.constant 8 : index
    %c0_203 = arith.constant 0 : index
    %645 = vector.load %arg6[%c0_201, %c8_202, %c0_203] : memref<1x16x4xf32, #tpu.memory_space<vmem>>, vector<1x8x4xf32>
    %646 = vector.shape_cast %645 : vector<1x8x4xf32> to vector<8x4xf32>
    %647 = vector.shape_cast %1 : vector<8x4xf32> to vector<1x8x4xf32>
    tpu.vector_store %arg6[%c0_201, %c8_202, %c0_203], %647 {strides = array<i32>} : memref<1x16x4xf32, #tpu.memory_space<vmem>>, vector<1x8x4xf32>,
    return
  }
  func.func @transform_0(%arg0: i32) -> (i32, i32, i32) {
    %c0_i32 = arith.constant 0 : i32
    %c0_i32_0 = arith.constant 0 : i32
    %c0_i32_1 = arith.constant 0 : i32
    return %arg0, %c0_i32, %c0_i32_0 : i32, i32, i32
  }
  func.func @transform_1(%arg0: i32) -> (i32, i32, i32) {
    %c0_i32 = arith.constant 0 : i32
    %c0_i32_0 = arith.constant 0 : i32
    %c0_i32_1 = arith.constant 0 : i32
    %c0_i32_2 = arith.constant 0 : i32
    return %c0_i32, %c0_i32_0, %c0_i32_1 : i32, i32, i32
  }
  func.func @transform_2(%arg0: i32) -> (i32, i32) {
    %c0_i32 = arith.constant 0 : i32
    %c0_i32_0 = arith.constant 0 : i32
    %c0_i32_1 = arith.constant 0 : i32
    return %c0_i32, %c0_i32_0 : i32, i32
  }
  func.func @transform_3(%arg0: i32) -> (i32, i32, i32) {
    %c0_i32 = arith.constant 0 : i32
    %c0_i32_0 = arith.constant 0 : i32
    %c0_i32_1 = arith.constant 0 : i32
    %c0_i32_2 = arith.constant 0 : i32
    return %c0_i32, %c0_i32_0, %c0_i32_1 : i32, i32, i32
  }
  func.func @transform_4(%arg0: i32) -> (i32, i32) {
    %c0_i32 = arith.constant 0 : i32
    %c0_i32_0 = arith.constant 0 : i32
    %c0_i32_1 = arith.constant 0 : i32
    return %c0_i32, %c0_i32_0 : i32, i32
  }
  func.func @transform_5(%arg0: i32) -> (i32, i32, i32) {
    %c0_i32 = arith.constant 0 : i32
    %c0_i32_0 = arith.constant 0 : i32
    %c0_i32_1 = arith.constant 0 : i32
    return %arg0, %c0_i32, %c0_i32_0 : i32, i32, i32
  }
  func.func @transform_6(%arg0: i32) -> (i32, i32, i32) {
    %c0_i32 = arith.constant 0 : i32
    %c0_i32_0 = arith.constant 0 : i32
    %c0_i32_1 = arith.constant 0 : i32
    return %arg0, %c0_i32, %c0_i32_0 : i32, i32, i32
  }
}

</mosaic_0001>

<bundles_post_ra>
// kernel: tpu_custom_call.1
= control target key start
LH: loop header
LB: loop body
LE: loop exit
PB: predicated region body
PF: predicated region fallthrough
CT: control target
= control target key end

     0   :  { %s1614_s21 = smov 0   ;;  %s2083_s0 = inlined_call_operand.vmem [shape: f32[2,8,4], index: 0, kind: input, shape index: {}]   ;;  %s2084_s1 = inlined_call_operand.vmem [shape: f32[8,8,1], index: 1, kind: input, shape index: {}]   ;;  %s2085_s2 = inlined_call_operand.vmem [shape: f32[8,1], index: 2, kind: input, shape index: {}]   ;;  %s2086_s3 = inlined_call_operand.vmem [shape: f32[72,8,1], index: 3, kind: input, shape index: {}]   ;;  %s2087_s4 = inlined_call_operand.vmem [shape: f32[8,1], index: 4, kind: input, shape index: {}]   ;;  %s2088_s5 = inlined_call_operand.vmem [shape: f32[2,16,4], index: 5, kind: output, shape index: {0}]   ;;  %s2089_s6 = inlined_call_operand.vmem [shape: f32[2,8,4], index: 6, kind: output, shape index: {1}]  }
   0x1 LB: > { %s1457_s22 = sadd.s32 4294967295, %s1570_s21   ;;  %p1461_p0 = scmp.ge.s32.totalorder %s1570_s21, 1  ;;  %s1570_s21 = sphi %s1614_s21, %s17_s21  }
   0x2   : > { %p214_p1 = scmp.lt.s32.totalorder %s1570_s21, 3 }
   0x4   : > { %p215_p2 = pnand %p1461_p0, %p214_p1 }
   0x5   : > { %p247_p3 = scmp.lt.s32.totalorder (!%p215_p2), %s1457_s22, 1  ;;  %s1573_s24 = smov (!%p215_p2), 2  }
   0x6   : > { %218 = sbr.rel (%p215_p2) target bundleno = 437 (0x1b5), region = 40  ;;  %s1574_s25 = smov (!%p215_p2), 3  }
   0x7   : > { %s1575_s10 = smov (!%p215_p2), 1   ;;  %s1576_s19 = smov (!%p215_p2), 127  }
   0x8   : > { %s1577_s30 = smov (!%p215_p2), 125   ;;  %s1578_s27 = smov (!%p215_p2), 126  }
   0xb   : > { %v1466_v0 = vld [vmem:[%s2084_s1 + $0x8] sm:$0xff]  ;;  %v261_v1 = vld [vmem:[%s2085_s2] sm:$0xff]  ;;  %v1572_v2 = vmov 0   ;;  %v1467_v3 = vld [vmem:[%s2084_s1 + $0x10] sm:$0xff]  ;;  %s2095_s22 = smov (!%p247_p3, %s1457_s22), 1  ;;  %v274_v20 = vlaneseq  ;;  %vm371_vm0 = vcmask 31744  }
   0xc   : > { %1563 = vset.pattern.permute.xlu1 %v1572_v2  ;;  %1562 = vset.pattern.permute.xlu0 %v1572_v2  ;;  %v268_v4 = vld [vmem:[%s2084_s1] sm:$0xff]  ;;  %v1468_v6 = vld [vmem:[%s2084_s1 + $0x18] sm:$0xff]  ;;  %v1471_v7 = vld [vmem:[%s2084_s1 + $0x30] sm:$0xff]  ;;  %s1462_s15 = sshll.u32 %s2095_s22, 3  ;;  %vm393_vm1 = vcmask 23552   ;;  %vm401_vm3 = vcmask 15360  }
   0xd   : > { %284 = vperm.xlu1 %1563, %v1466_v0   ;;  %264 = vperm.xlu0 %1562, %v261_v1   ;;  %v1469_v5 = vld [vmem:[%s2084_s1 + $0x20] sm:$0xff]  ;;  %v1470_v8 = vld [vmem:[%s2084_s1 + $0x28] sm:$0xff]  ;;  %v1472_v10 = vld [vmem:[%s2084_s1 + $0x38] sm:$0xff]  ;;  %v275_v21 = vshrl.u32 %v274_v20, 7  ;;  %s250_s18 = scalar_lea.vmem %s2083_s0, %s1462_s15  ;;  %s259_s23 = scalar_lea.vmem %s2089_s6, %s1462_s15  ;;  %vm406_vm4 = vcmask 7168  }
   0xe   : > { %v427_v9 = vld [vmem:[%s2087_s4] sm:$0xff]  ;;  %v1473_v11 = vld [vmem:[%s2086_s3 + $0x8] sm:$0xff]  ;;  %v1475_v13 = vld [vmem:[%s2086_s3 + $0x18] sm:$0xff] }
   0xf   : > { %v434_v12 = vld [vmem:[%s2086_s3] sm:$0xff]  ;;  %v1474_v14 = vld [vmem:[%s2086_s3 + $0x10] sm:$0xff]  ;;  %v1692_v22 = vsub.s32 0, %v275_v21  ;;  %v1696_v24 = vsub.s32 1, %v275_v21  ;;  %v1698_v27 = vsub.s32 2, %v275_v21  ;;  %v1704_v30 = vsub.s32 3, %v275_v21 }
  0x10   : > { %v1476_v15 = vld [vmem:[%s2086_s3 + $0x20] sm:$0xff]  ;;  %v1478_v16 = vld [vmem:[%s2086_s3 + $0x30] sm:$0xff]  ;;  %v1708_v35 = vsub.s32 4, %v275_v21  ;;  %v1712_v39 = vsub.s32 5, %v275_v21  ;;  %v1716_v45 = vsub.s32 6, %v275_v21  ;;  %v1720_v49 = vsub.s32 7, %v275_v21 }
  0x11   : > { %297 = vperm.xlu1 %1563, %v1467_v3   ;;  %271 = vperm.xlu0 %1562, %v268_v4   ;;  %v1480_v17 = vld [vmem:[%s2086_s3 + $0x40] sm:$0xff]  ;;  %v1482_v18 = vld [vmem:[%s2086_s3 + $0x50] sm:$0xff]  ;;  %v1477_v1 = vld [vmem:[%s2086_s3 + $0x28] sm:$0xff] }
  0x12   : > { %v1484_v19 = vld [vmem:[%s2086_s3 + $0x60] sm:$0xff]  ;;  %v1486_v0 = vld [vmem:[%s2086_s3 + $0x70] sm:$0xff]  ;;  %v1479_v3 = vld [vmem:[%s2086_s3 + $0x38] sm:$0xff] }
  0x13   : > { %v1694_v23 = vld [vmem:[%s250_s18] sm:$0xff]  ;;  %v1490_v4 = vld [vmem:[%s2086_s3 + $0x90] sm:$0xff]  ;;  %v1495_v21 = vld [vmem:[%s2086_s3 + $0xb8] sm:$0xff] }
  0x14   : > { %v277_v28 = vrot.slane %v1694_v23, %v1692_v22  ;;  %v290_v29 = vrot.slane %v1694_v23, %v1696_v24  ;;  %v303_v33 = vrot.slane %v1694_v23, %v1698_v27  ;;  %v316_v38 = vrot.slane %v1694_v23, %v1704_v30  ;;  %v1488_v2 = vld [vmem:[%s2086_s3 + $0x80] sm:$0xff] }
  0x15   : > { %323 = vperm.xlu1 %1563, %v1469_v5   ;;  %310 = vperm.xlu0 %1562, %v1468_v6   ;;  %v329_v44 = vrot.slane %v1694_v23, %v1708_v35  ;;  %v342_v48 = vrot.slane %v1694_v23, %v1712_v39  ;;  %v355_v53 = vrot.slane %v1694_v23, %v1716_v45  ;;  %v1481_v5 = vld [vmem:[%s2086_s3 + $0x48] sm:$0xff]  ;;  %v1492_v6 = vld [vmem:[%s2086_s3 + $0xa0] sm:$0xff] }
  0x16   : > { %v368_v57 = vrot.slane %v1694_v23, %v1720_v49 }
  0x19   : > { %349 = vperm.xlu1 %1563, %v1471_v7   ;;  %336 = vperm.xlu0 %1562, %v1470_v8   ;;  %v1483_v7 = vld [vmem:[%s2086_s3 + $0x58] sm:$0xff]  ;;  %v1494_v8 = vld [vmem:[%s2086_s3 + $0xb0] sm:$0xff] }
  0x1d   : > { %430 = vperm.xlu1 %1563, %v427_v9   ;;  %362 = vperm.xlu0 %1562, %v1472_v10   ;;  %v1485_v9 = vld [vmem:[%s2086_s3 + $0x68] sm:$0xff]  ;;  %v1496_v10 = vld [vmem:[%s2086_s3 + $0xc0] sm:$0xff] }
  0x21   : > { %450 = vperm.xlu1 %1563, %v1473_v11   ;;  %437 = vperm.xlu0 %1562, %v434_v12   ;;  %v1487_v11 = vld [vmem:[%s2086_s3 + $0x78] sm:$0xff]  ;;  %v1498_v12 = vld [vmem:[%s2086_s3 + $0xd0] sm:$0xff] }
  0x25   : > { %476 = vperm.xlu1 %1563, %v1475_v13   ;;  %463 = vperm.xlu0 %1562, %v1474_v14   ;;  %v1489_v13 = vld [vmem:[%s2086_s3 + $0x88] sm:$0xff]  ;;  %v1500_v14 = vld [vmem:[%s2086_s3 + $0xe0] sm:$0xff] }
  0x29   : > { %489 = vperm.xlu0 %1562, %v1476_v15   ;;  %v1502_v15 = vld [vmem:[%s2086_s3 + $0xf0] sm:$0xff] }
  0x2d   : > { %515 = vperm.xlu0 %1562, %v1478_v16   ;;  %v1491_v16 = vld [vmem:[%s2086_s3 + $0x98] sm:$0xff] }
  0x31   : > { %541 = vperm.xlu0 %1562, %v1480_v17   ;;  %v1504_v17 = vld [vmem:[%s2086_s3 + $0x100] sm:$0xff] }
  0x35   : > { %567 = vperm.xlu0 %1562, %v1482_v18   ;;  %v1493_v18 = vld [vmem:[%s2086_s3 + $0xa8] sm:$0xff] }
  0x39   : > { %593 = vperm.xlu0 %1562, %v1484_v19   ;;  %v1506_v19 = vld [vmem:[%s2086_s3 + $0x110] sm:$0xff] }
  0x88   : > { %v285_v25 = vpop.permute.xlu1 %284  ;;  %v265_v26 = vpop.permute.xlu0 %264 }
  0x89   : > { %v291_v36 = vmul.f32 %v290_v29, %v285_v25  ;;  %v1508_v25 = vld [vmem:[%s2086_s3 + $0x120] sm:$0xff]  ;;  %v1499_v29 = vld [vmem:[%s2086_s3 + $0xd8] sm:$0xff] }
  0x8c   : > { %v298_v31 = vpop.permute.xlu1 %297  ;;  %v272_v32 = vpop.permute.xlu0 %271 }
  0x8d   : > { %v278_v34 = vmul.f32 %v277_v28, %v272_v32  ;;  %v304_v42 = vmul.f32 %v303_v33, %v298_v31  ;;  %v1510_v28 = vld [vmem:[%s2086_s3 + $0x130] sm:$0xff]  ;;  %v1512_v31 = vld [vmem:[%s2086_s3 + $0x140] sm:$0xff]  ;;  %v1501_v32 = vld [vmem:[%s2086_s3 + $0xe8] sm:$0xff] }
  0x8e   : > { %v1514_v33 = vld [vmem:[%s2086_s3 + $0x150] sm:$0xff] }
  0x8f   : > { %v279_v37 = vadd.f32 %v278_v34, %v265_v26  ;;  %v1497_v26 = vld [vmem:[%s2086_s3 + $0xc8] sm:$0xff]  ;;  %v1503_v34 = vld [vmem:[%s2086_s3 + $0xf8] sm:$0xff] }
  0x90   : > { %v324_v40 = vpop.permute.xlu1 %323  ;;  %v311_v41 = vpop.permute.xlu0 %310 }
  0x91   : > { %v292_v43 = vadd.f32 %v291_v36, %v279_v37  ;;  %v317_v47 = vmul.f32 %v316_v38, %v311_v41  ;;  %v330_v51 = vmul.f32 %v329_v44, %v324_v40  ;;  %v1505_v36 = vld [vmem:[%s2086_s3 + $0x108] sm:$0xff]  ;;  %v1516_v37 = vld [vmem:[%s2086_s3 + $0x160] sm:$0xff]  ;;  %v1507_v38 = vld [vmem:[%s2086_s3 + $0x118] sm:$0xff] }
  0x92   : > { %v1518_v40 = vld [vmem:[%s2086_s3 + $0x170] sm:$0xff]  ;;  %v1509_v41 = vld [vmem:[%s2086_s3 + $0x128] sm:$0xff] }
  0x93   : > { %v305_v46 = vadd.f32 %v304_v42, %v292_v43  ;;  %v1520_v42 = vld [vmem:[%s2086_s3 + $0x180] sm:$0xff]  ;;  %v1511_v43 = vld [vmem:[%s2086_s3 + $0x138] sm:$0xff]  ;;  %v1522_v44 = vld [vmem:[%s2086_s3 + $0x190] sm:$0xff] }
  0x94   : > { %v337_v50 = vpop.permute.xlu0 %336  ;;  %v350_v54 = vpop.permute.xlu1 %349 }
  0x95   : > { %v318_v52 = vadd.f32 %v317_v47, %v305_v46  ;;  %v343_v56 = vmul.f32 %v342_v48, %v337_v50  ;;  %v356_v59 = vmul.f32 %v355_v53, %v350_v54  ;;  %v1513_v46 = vld [vmem:[%s2086_s3 + $0x148] sm:$0xff]  ;;  %v1524_v47 = vld [vmem:[%s2086_s3 + $0x1a0] sm:$0xff]  ;;  %v1515_v48 = vld [vmem:[%s2086_s3 + $0x158] sm:$0xff] }
  0x96   : > { %v1528_v54 = vld [vmem:[%s2086_s3 + $0x1c0] sm:$0xff] }
  0x97   : > { %v331_v55 = vadd.f32 %v330_v51, %v318_v52  ;;  %v1526_v51 = vld [vmem:[%s2086_s3 + $0x1b0] sm:$0xff]  ;;  %v1517_v52 = vld [vmem:[%s2086_s3 + $0x168] sm:$0xff] }
  0x98   : > { %v363_v58 = vpop.permute.xlu0 %362 }
  0x99   : > { %v344_v60 = vadd.f32 %v343_v56, %v331_v55  ;;  %v369_v62 = vmul.f32 %v368_v57, %v363_v58  ;;  %v1519_v55 = vld [vmem:[%s2086_s3 + $0x178] sm:$0xff]  ;;  %v1521_v56 = vld [vmem:[%s2086_s3 + $0x188] sm:$0xff]  ;;  %v1530_v58 = vld [vmem:[%s2086_s3 + $0x1d0] sm:$0xff] }
  0x9b   : > { %v357_v61 = vadd.f32 %v356_v59, %v344_v60  ;;  %v1523_v59 = vld [vmem:[%s2086_s3 + $0x198] sm:$0xff]  ;;  %v431_v60 = vpop.permute.xlu1 %430 }
  0x9c   : > { %v438_v50 = vpop.permute.xlu0 %437 }
  0x9d   : > { %v1731_v63 = vadd.f32 %v369_v62, %v357_v61  ;;  %v1532_v62 = vld [vmem:[%s2086_s3 + $0x1e0] sm:$0xff] }
  0x9f   : > { %398 = vrot.lane.b32.xlu0 %v1731_v63, %s1573_s24  ;;  %390 = vrot.lane.b32.xlu1 %v1731_v63, %s1574_s25  ;;  %372 = vst.msk [vmem:[%s259_s23] sm:$0xff] %vm371_vm0, %v1731_v63  ;;  %s1546_s24 = sshll.u32 %s2095_s22, 4 }
  0xa0   : > { %v464_v53 = vpop.permute.xlu0 %463 }
  0xa3   : > { %619 = vperm.xlu0 %1562, %v1486_v0   ;;  %502 = vperm.xlu1 %1563, %v1477_v1   ;;  %v1525_v0 = vld [vmem:[%s2086_s3 + $0x1a8] sm:$0xff]  ;;  %v451_v1 = vpop.permute.xlu1 %450 }
  0xa4   : > { %v1874_v57 = vpop.permute.xlu0 %489 }
  0xa7   : > { %645 = vperm.xlu0 %1562, %v1488_v2   ;;  %528 = vperm.xlu1 %1563, %v1479_v3   ;;  %v1534_v2 = vld [vmem:[%s2086_s3 + $0x1f0] sm:$0xff]  ;;  %v1527_v3 = vld [vmem:[%s2086_s3 + $0x1b8] sm:$0xff] }
  0xa8   : > { %v1883_v61 = vpop.permute.xlu0 %515 }
  0xab   : > { %671 = vperm.xlu0 %1562, %v1490_v4   ;;  %554 = vperm.xlu1 %1563, %v1481_v5   ;;  %v1898_v4 = vand.u32 127, %v274_v20 }
  0xac   : > { %v1900_v5 = vpop.permute.xlu0 %541 }
  0xaf   : > { %697 = vperm.xlu0 %1562, %v1492_v6   ;;  %580 = vperm.xlu1 %1563, %v1483_v7   ;;  %v1536_v6 = vld [vmem:[%s2086_s3 + $0x200] sm:$0xff]  ;;  %v1529_v7 = vld [vmem:[%s2086_s3 + $0x1c8] sm:$0xff] }
  0xb0   : > { %v1909_v20 = vpop.permute.xlu0 %567 }
  0xb3   : > { %723 = vperm.xlu0 %1562, %v1494_v8   ;;  %606 = vperm.xlu1 %1563, %v1485_v9   ;;  %v379_v8 = vand.u32 1, %v1898_v4  ;;  %v477_v9 = vpop.permute.xlu1 %476 }
  0xb5   : > { %vm1913_vm2 = vcmp.ge.s32.totalorder %v379_v8, 1  ;;  %vm1986_vm5 = vcmp.le.s32.totalorder %v379_v8, 0 }
  0xb7   : > { %749 = vperm.xlu0 %1562, %v1496_v10   ;;  %632 = vperm.xlu1 %1563, %v1487_v11   ;;  %v1538_v11 = vld [vmem:[%s2086_s3 + $0x210] sm:$0xff] }
  0xbb   : > { %775 = vperm.xlu0 %1562, %v1498_v12   ;;  %658 = vperm.xlu1 %1563, %v1489_v13  }
  0xbf   : > { %801 = vperm.xlu0 %1562, %v1500_v14   ;;  %403 = vrot.lane.b32.xlu1 %v1731_v63, %s1575_s10 }
  0xc3   : > { %827 = vperm.xlu0 %1562, %v1502_v15   ;;  %684 = vperm.xlu1 %1563, %v1491_v16  }
  0xc7   : > { %853 = vperm.xlu0 %1562, %v1504_v17   ;;  %710 = vperm.xlu1 %1563, %v1493_v18   ;;  %v1540_v17 = vld [vmem:[%s2086_s3 + $0x220] sm:$0xff]  ;;  %v1531_v18 = vld [vmem:[%s2086_s3 + $0x1d8] sm:$0xff] }
  0xcb   : > { %879 = vperm.xlu0 %1562, %v1506_v19   ;;  %736 = vperm.xlu1 %1563, %v1495_v21   ;;  %v1932_v19 = vpop.permute.xlu0 %593 }
  0xcf   : > { %905 = vperm.xlu0 %1562, %v1508_v25   ;;  %762 = vperm.xlu1 %1563, %v1497_v26  }
  0xd3   : > { %931 = vperm.xlu0 %1562, %v1510_v28   ;;  %788 = vperm.xlu1 %1563, %v1499_v29   ;;  %v1542_v29 = vld [vmem:[%s2086_s3 + $0x230] sm:$0xff] }
  0xd7   : > { %957 = vperm.xlu0 %1562, %v1512_v31   ;;  %814 = vperm.xlu1 %1563, %v1501_v32   ;;  %v1533_v31 = vld [vmem:[%s2086_s3 + $0x1e8] sm:$0xff] }
  0xdb   : > { %983 = vperm.xlu0 %1562, %v1514_v33   ;;  %840 = vperm.xlu1 %1563, %v1503_v34  }
  0xdf   : > { %412 = vrot.lane.b32.xlu0 %v1731_v63, %s1576_s19  ;;  %866 = vperm.xlu1 %1563, %v1505_v36  }
  0xe3   : > { %1009 = vperm.xlu0 %1562, %v1516_v37   ;;  %892 = vperm.xlu1 %1563, %v1507_v38  }
  0xe7   : > { %1035 = vperm.xlu0 %1562, %v1518_v40   ;;  %918 = vperm.xlu1 %1563, %v1509_v41   ;;  %v1535_v41 = vld [vmem:[%s2086_s3 + $0x1f8] sm:$0xff] }
  0xeb   : > { %1061 = vperm.xlu0 %1562, %v1520_v42   ;;  %944 = vperm.xlu1 %1563, %v1511_v43  }
  0xef   : > { %1087 = vperm.xlu0 %1562, %v1522_v44   ;;  %970 = vperm.xlu1 %1563, %v1513_v46  }
  0xf3   : > { %1113 = vperm.xlu0 %1562, %v1524_v47   ;;  %996 = vperm.xlu1 %1563, %v1515_v48  }
  0xf7   : > { %1139 = vperm.xlu0 %1562, %v1526_v51   ;;  %1022 = vperm.xlu1 %1563, %v1517_v52  }
  0xfb   : > { %1165 = vperm.xlu0 %1562, %v1528_v54   ;;  %1048 = vperm.xlu1 %1563, %v1519_v55  }
  0xff   : > { %422 = vrot.lane.b32.xlu0 %v1731_v63, %s1577_s30  ;;  %1074 = vperm.xlu1 %1563, %v1521_v56  }
 0x103   : > { %1191 = vperm.xlu0 %1562, %v1530_v58   ;;  %1100 = vperm.xlu1 %1563, %v1523_v59  }
 0x107   : > { %1217 = vperm.xlu0 %1562, %v1532_v62   ;;  %1126 = vperm.xlu1 %1563, %v1525_v0   ;;  %v1539_v0 = vld [vmem:[%s2086_s3 + $0x218] sm:$0xff] }
 0x10b   : > { %1243 = vperm.xlu0 %1562, %v1534_v2   ;;  %1152 = vperm.xlu1 %1563, %v1527_v3  }
 0x10f   : > { %1269 = vperm.xlu0 %1562, %v1536_v6   ;;  %1178 = vperm.xlu1 %1563, %v1529_v7  }
 0x111   : > { %v391_v12 = vpop.permute.xlu1 %390  ;;  %v399_v33 = vpop.permute.xlu0 %398 }
 0x112   : > { %v394_v13 = vsel %vm393_vm1, 0.0, %v391_v12  ;;  %v1541_v12 = vld [vmem:[%s2086_s3 + $0x228] sm:$0xff] }
 0x113   : > { %v397_v14 = vsel %vm1913_vm2, %v394_v13, 0.0  ;;  %1295 = vperm.xlu0 %1562, %v1538_v11   ;;  %418 = vrot.lane.b32.xlu1 %v1731_v63, %s1578_s27  ;;  %s1975_s27 = scalar_lea.vmem %s2088_s5, %s1546_s24 }
 0x114   : > { %v443_v15 = vrot.slane %v397_v14, %v1692_v22  ;;  %v456_v16 = vrot.slane %v397_v14, %v1696_v24  ;;  %v469_v25 = vrot.slane %v397_v14, %v1698_v27  ;;  %v482_v28 = vrot.slane %v397_v14, %v1704_v30  ;;  %1370 = vst.msk [vmem:[%s1975_s27 + $0x8] sm:$0xff] %vm371_vm0, %v1694_v23 }
 0x115   : > { %v495_v37 = vrot.slane %v397_v14, %v1708_v35  ;;  %v508_v42 = vrot.slane %v397_v14, %v1712_v39  ;;  %v521_v47 = vrot.slane %v397_v14, %v1716_v45  ;;  %v534_v54 = vrot.slane %v397_v14, %v1720_v49 }
 0x116   : > { %v444_v21 = vmul.f32 %v443_v15, %v438_v50  ;;  %v457_v26 = vmul.f32 %v456_v16, %v451_v1  ;;  %v470_v36 = vmul.f32 %v469_v25, %v464_v53  ;;  %v483_v40 = vmul.f32 %v482_v28, %v477_v9  ;;  %v1537_v53 = vld [vmem:[%s2086_s3 + $0x208] sm:$0xff] }
 0x117   : > { %1321 = vperm.xlu0 %1562, %v1540_v17   ;;  %1204 = vperm.xlu1 %1563, %v1531_v18   ;;  %v496_v46 = vmul.f32 %v495_v37, %v1874_v57  ;;  %v402_v50 = vsel %vm401_vm3, 0.0, %v399_v33  ;;  %v522_v55 = vmul.f32 %v521_v47, %v1883_v61 }
 0x118   : > { %v445_v32 = vadd.f32 %v444_v21, %v431_v60  ;;  %v547_v57 = vrot.slane %v402_v50, %v1692_v22  ;;  %v560_v1 = vrot.slane %v402_v50, %v1696_v24  ;;  %v573_v61 = vrot.slane %v402_v50, %v1698_v27  ;;  %v1543_v21 = vld [vmem:[%s2086_s3 + $0x238] sm:$0xff] }
 0x119   : > { %v586_v13 = vrot.slane %v402_v50, %v1704_v30  ;;  %v599_v25 = vrot.slane %v402_v50, %v1708_v35 }
 0x11a   : > { %v458_v34 = vadd.f32 %v457_v26, %v445_v32  ;;  %v548_v6 = vmul.f32 %v547_v57, %v1900_v5  ;;  %v574_v16 = vmul.f32 %v573_v61, %v1909_v20 }
 0x11b   : > { %1347 = vperm.xlu0 %1562, %v1542_v29   ;;  %1230 = vperm.xlu1 %1563, %v1533_v31   ;;  %v600_v20 = vmul.f32 %v599_v25, %v1932_v19  ;;  %v612_v31 = vrot.slane %v402_v50, %v1712_v39 }
 0x11c   : > { %v471_v38 = vadd.f32 %v470_v36, %v458_v34 }
 0x11e   : > { %v620_v43 = vpop.permute.xlu0 %619  ;;  %v484_v44 = vadd.f32 %v483_v40, %v471_v38  ;;  %v503_v48 = vpop.permute.xlu1 %502  ;;  %v625_v40 = vrot.slane %v402_v50, %v1716_v45 }
 0x11f   : > { %v509_v51 = vmul.f32 %v508_v42, %v503_v48  ;;  %1256 = vperm.xlu1 %1563, %v1535_v41  }
 0x120   : > { %v497_v52 = vadd.f32 %v496_v46, %v484_v44  ;;  %v626_v42 = vmul.f32 %v625_v40, %v620_v43  ;;  %v638_v44 = vrot.slane %v402_v50, %v1720_v49 }
 0x122   : > { %v510_v56 = vadd.f32 %v509_v51, %v497_v52  ;;  %v646_v58 = vpop.permute.xlu0 %645  ;;  %v529_v59 = vpop.permute.xlu1 %528 }
 0x123   : > { %v535_v60 = vmul.f32 %v534_v54, %v529_v59  ;;  %1282 = vperm.xlu1 %1563, %v1537_v53  }
 0x124   : > { %v523_v62 = vadd.f32 %v522_v55, %v510_v56 }
 0x126   : > { %v536_v2 = vadd.f32 %v535_v60, %v523_v62  ;;  %v672_v3 = vpop.permute.xlu0 %671  ;;  %v555_v7 = vpop.permute.xlu1 %554 }
 0x127   : > { %v561_v9 = vmul.f32 %v560_v1, %v555_v7  ;;  %1308 = vperm.xlu1 %1563, %v1539_v0  }
 0x128   : > { %v549_v11 = vadd.f32 %v548_v6, %v536_v2 }
 0x12a   : > { %v562_v14 = vadd.f32 %v561_v9, %v549_v11  ;;  %v698_v15 = vpop.permute.xlu0 %697  ;;  %v581_v17 = vpop.permute.xlu1 %580 }
 0x12b   : > { %v587_v18 = vmul.f32 %v586_v13, %v581_v17  ;;  %1334 = vperm.xlu1 %1563, %v1541_v12  }
 0x12c   : > { %v575_v5 = vadd.f32 %v574_v16, %v562_v14 }
 0x12e   : > { %v724_v26 = vpop.permute.xlu0 %723  ;;  %v607_v28 = vpop.permute.xlu1 %606  ;;  %v588_v29 = vadd.f32 %v587_v18, %v575_v5 }
 0x12f   : > { %1360 = vperm.xlu1 %1563, %v1543_v21   ;;  %v613_v36 = vmul.f32 %v612_v31, %v607_v28 }
 0x130   : > { %v601_v34 = vadd.f32 %v600_v20, %v588_v29 }
 0x132   : > { %v750_v32 = vpop.permute.xlu0 %749  ;;  %v633_v33 = vpop.permute.xlu1 %632  ;;  %v614_v41 = vadd.f32 %v613_v36, %v601_v34 }
 0x133   : > { %v639_v48 = vmul.f32 %v638_v44, %v633_v33 }
 0x134   : > { %v627_v47 = vadd.f32 %v626_v42, %v614_v41 }
 0x136   : > { %v776_v37 = vpop.permute.xlu0 %775  ;;  %v659_v38 = vpop.permute.xlu1 %658  ;;  %v640_v4 = vadd.f32 %v639_v48, %v627_v47 }
 0x13a   : > { %v802_v19 = vpop.permute.xlu0 %801  ;;  %v404_v46 = vpop.permute.xlu1 %403 }
 0x13b   : > { %v407_v51 = vsel %vm406_vm4, 0.0, %v404_v46 }
 0x13c   : > { %v410_v52 = vsel %vm1986_vm5, %v407_v51, 0.0  ;;  %v411_v14 = vsel %vm1913_vm2, %v407_v51, 0.0 }
 0x13d   : > { %v651_v53 = vrot.slane %v410_v52, %v1692_v22  ;;  %v664_v43 = vrot.slane %v410_v52, %v1696_v24  ;;  %v677_v55 = vrot.slane %v410_v52, %v1698_v27  ;;  %v690_v57 = vrot.slane %v410_v52, %v1704_v30 }
 0x13e   : > { %v828_v50 = vpop.permute.xlu0 %827  ;;  %v685_v54 = vpop.permute.xlu1 %684  ;;  %v703_v2 = vrot.slane %v410_v52, %v1708_v35  ;;  %v729_v13 = vrot.slane %v410_v52, %v1716_v45  ;;  %v742_v25 = vrot.slane %v410_v52, %v1720_v49  ;;  %v755_v28 = vrot.slane %v411_v14, %v1692_v22 }
 0x13f   : > { %v652_v8 = vmul.f32 %v651_v53, %v646_v58  ;;  %v665_v59 = vmul.f32 %v664_v43, %v659_v38  ;;  %v678_v1 = vmul.f32 %v677_v55, %v672_v3  ;;  %v691_v7 = vmul.f32 %v690_v57, %v685_v54 }
 0x140   : > { %v704_v12 = vmul.f32 %v703_v2, %v698_v15  ;;  %v716_v58 = vrot.slane %v410_v52, %v1712_v39  ;;  %v730_v21 = vmul.f32 %v729_v13, %v724_v26  ;;  %v756_v34 = vmul.f32 %v755_v28, %v750_v32 }
 0x141   : > { %v653_v56 = vadd.f32 %v652_v8, %v640_v4  ;;  %v768_v36 = vrot.slane %v411_v14, %v1696_v24  ;;  %v781_v38 = vrot.slane %v411_v14, %v1698_v27  ;;  %v794_v47 = vrot.slane %v411_v14, %v1704_v30 }
 0x142   : > { %v854_v60 = vpop.permute.xlu0 %853  ;;  %v711_v62 = vpop.permute.xlu1 %710  ;;  %v807_v48 = vrot.slane %v411_v14, %v1708_v35  ;;  %v833_v32 = vrot.slane %v411_v14, %v1716_v45  ;;  %v820_v8 = vrot.slane %v411_v14, %v1712_v39 }
 0x143   : > { %v666_v0 = vadd.f32 %v665_v59, %v653_v56  ;;  %v717_v17 = vmul.f32 %v716_v58, %v711_v62  ;;  %v782_v26 = vmul.f32 %v781_v38, %v776_v37  ;;  %v885_v58 = vrot.slane %v1731_v63, %v1698_v27 }
 0x144   : > { %v808_v4 = vmul.f32 %v807_v48, %v802_v19  ;;  %v834_v62 = vmul.f32 %v833_v32, %v828_v50  ;;  %v872_v19 = vrot.slane %v1731_v63, %v1696_v24 }
 0x145   : > { %v679_v6 = vadd.f32 %v678_v1, %v666_v0  ;;  %v846_v0 = vrot.slane %v411_v14, %v1720_v49  ;;  %v859_v1 = vrot.slane %v1731_v63, %v1692_v22 }
 0x146   : > { %v880_v61 = vpop.permute.xlu0 %879  ;;  %v737_v9 = vpop.permute.xlu1 %736 }
 0x147   : > { %v692_v11 = vadd.f32 %v691_v7, %v679_v6  ;;  %v743_v20 = vmul.f32 %v742_v25, %v737_v9  ;;  %v886_v14 = vmul.f32 %v885_v58, %v880_v61 }
 0x149   : > { %v705_v16 = vadd.f32 %v704_v12, %v692_v11  ;;  %v860_v11 = vmul.f32 %v859_v1, %v854_v60 }
 0x14a   : > { %v906_v18 = vpop.permute.xlu0 %905  ;;  %v763_v5 = vpop.permute.xlu1 %762 }
 0x14b   : > { %v718_v3 = vadd.f32 %v717_v17, %v705_v16  ;;  %v769_v41 = vmul.f32 %v768_v36, %v763_v5  ;;  %v937_v36 = vrot.slane %v1731_v63, %v1716_v45 }
 0x14d   : > { %v731_v29 = vadd.f32 %v730_v21, %v718_v3  ;;  %v898_v3 = vrot.slane %v1731_v63, %v1704_v30  ;;  %v911_v21 = vrot.slane %v1731_v63, %v1708_v35 }
 0x14e   : > { %v932_v15 = vpop.permute.xlu0 %931  ;;  %v789_v31 = vpop.permute.xlu1 %788 }
 0x14f   : > { %v744_v33 = vadd.f32 %v743_v20, %v731_v29  ;;  %v795_v52 = vmul.f32 %v794_v47, %v789_v31  ;;  %v912_v31 = vmul.f32 %v911_v21, %v906_v18  ;;  %v950_v47 = vrot.slane %v1731_v63, %v1720_v49 }
 0x151   : > { %v757_v40 = vadd.f32 %v756_v34, %v744_v33  ;;  %v924_v34 = vrot.slane %v1731_v63, %v1712_v39 }
 0x152   : > { %v958_v42 = vpop.permute.xlu0 %957  ;;  %v815_v44 = vpop.permute.xlu1 %814 }
 0x153   : > { %v770_v46 = vadd.f32 %v769_v41, %v757_v40  ;;  %v821_v56 = vmul.f32 %v820_v8, %v815_v44 }
 0x155   : > { %v783_v51 = vadd.f32 %v782_v26, %v770_v46  ;;  %v938_v46 = vmul.f32 %v937_v36, %v932_v15 }
 0x156   : > { %v984_v53 = vpop.permute.xlu0 %983  ;;  %v841_v43 = vpop.permute.xlu1 %840 }
 0x157   : > { %v796_v54 = vadd.f32 %v795_v52, %v783_v51  ;;  %v847_v6 = vmul.f32 %v846_v0, %v841_v43 }
 0x159   : > { %v809_v55 = vadd.f32 %v808_v4, %v796_v54 }
 0x15a   : > { %v413_v59 = vpop.permute.xlu0 %412  ;;  %v867_v57 = vpop.permute.xlu1 %866 }
 0x15b   : > { %v822_v37 = vadd.f32 %v821_v56, %v809_v55  ;;  %v873_v50 = vmul.f32 %v872_v19, %v867_v57  ;;  %v415_v60 = vsel %vm393_vm1, %v413_v59, 0.0 }
 0x15c   : > { %v416_v61 = vsel %vm1986_vm5, %v415_v60, 0.0 }
 0x15d   : > { %v835_v2 = vadd.f32 %v834_v62, %v822_v37  ;;  %v963_v18 = vrot.slane %v416_v61, %v1692_v22  ;;  %v976_v4 = vrot.slane %v416_v61, %v1696_v24  ;;  %v989_v8 = vrot.slane %v416_v61, %v1698_v27 }
 0x15e   : > { %v1010_v7 = vpop.permute.xlu0 %1009  ;;  %v893_v9 = vpop.permute.xlu1 %892  ;;  %v1015_v57 = vrot.slane %v416_v61, %v1708_v35  ;;  %v1002_v37 = vrot.slane %v416_v61, %v1704_v30 }
 0x15f   : > { %v848_v12 = vadd.f32 %v847_v6, %v835_v2  ;;  %v899_v28 = vmul.f32 %v898_v3, %v893_v9  ;;  %v964_v54 = vmul.f32 %v963_v18, %v958_v42  ;;  %v990_v63 = vmul.f32 %v989_v8, %v984_v53 }
 0x160   : > { %v1016_v9 = vmul.f32 %v1015_v57, %v1010_v7 }
 0x161   : > { %v861_v13 = vadd.f32 %v860_v11, %v848_v12  ;;  %v1028_v11 = vrot.slane %v416_v61, %v1712_v39  ;;  %v1041_v12 = vrot.slane %v416_v61, %v1716_v45 }
 0x162   : > { %v1036_v16 = vpop.permute.xlu0 %1035  ;;  %v919_v17 = vpop.permute.xlu1 %918 }
 0x163   : > { %v874_v5 = vadd.f32 %v873_v50, %v861_v13  ;;  %v925_v40 = vmul.f32 %v924_v34, %v919_v17  ;;  %v417_v13 = vsel %vm1913_vm2, %v415_v60, 0.0  ;;  %v1042_v53 = vmul.f32 %v1041_v12, %v1036_v16 }
 0x164   : > { %v1067_v21 = vrot.slane %v417_v13, %v1692_v22  ;;  %v1080_v60 = vrot.slane %v417_v13, %v1696_v24  ;;  %v1093_v16 = vrot.slane %v417_v13, %v1698_v27  ;;  %v1106_v23 = vrot.slane %v417_v13, %v1704_v30 }
 0x165   : > { %v887_v25 = vadd.f32 %v886_v14, %v874_v5  ;;  %v1054_v5 = vrot.slane %v416_v61, %v1720_v49 }
 0x166   : > { %v1062_v29 = vpop.permute.xlu0 %1061  ;;  %v945_v20 = vpop.permute.xlu1 %944 }
 0x167   : > { %v900_v33 = vadd.f32 %v899_v28, %v887_v25  ;;  %v951_v51 = vmul.f32 %v950_v47, %v945_v20 }
 0x169   : > { %v913_v38 = vadd.f32 %v912_v31, %v900_v33  ;;  %v1068_v31 = vmul.f32 %v1067_v21, %v1062_v29 }
 0x16a   : > { %v1088_v41 = vpop.permute.xlu0 %1087  ;;  %v971_v44 = vpop.permute.xlu1 %970 }
 0x16b   : > { %v926_v26 = vadd.f32 %v925_v40, %v913_v38  ;;  %v977_v56 = vmul.f32 %v976_v4, %v971_v44  ;;  %v1094_v36 = vmul.f32 %v1093_v16, %v1088_v41  ;;  %v1119_v40 = vrot.slane %v417_v13, %v1708_v35 }
 0x16d   : > { %v939_v48 = vadd.f32 %v938_v46, %v926_v26 }
 0x16e   : > { %v1114_v52 = vpop.permute.xlu0 %1113  ;;  %v997_v43 = vpop.permute.xlu1 %996 }
 0x16f   : > { %v952_v32 = vadd.f32 %v951_v51, %v939_v48  ;;  %v1003_v1 = vmul.f32 %v1002_v37, %v997_v43  ;;  %v1120_v47 = vmul.f32 %v1119_v40, %v1114_v52  ;;  %v1132_v48 = vrot.slane %v417_v13, %v1712_v39 }
 0x171   : > { %v965_v55 = vadd.f32 %v964_v54, %v952_v32  ;;  %v1145_v32 = vrot.slane %v417_v13, %v1716_v45 }
 0x172   : > { %v1140_v59 = vpop.permute.xlu0 %1139  ;;  %v1023_v15 = vpop.permute.xlu1 %1022 }
 0x173   : > { %v978_v62 = vadd.f32 %v977_v56, %v965_v55  ;;  %v1029_v58 = vmul.f32 %v1028_v11, %v1023_v15  ;;  %v1146_v41 = vmul.f32 %v1145_v32, %v1140_v59  ;;  %v1158_v55 = vrot.slane %v417_v13, %v1720_v49 }
 0x175   : > { %v991_v0 = vadd.f32 %v990_v63, %v978_v62 }
 0x176   : > { %v1166_v2 = vpop.permute.xlu0 %1165  ;;  %v1049_v6 = vpop.permute.xlu1 %1048 }
 0x177   : > { %v1004_v42 = vadd.f32 %v1003_v1, %v991_v0  ;;  %v1055_v28 = vmul.f32 %v1054_v5, %v1049_v6 }
 0x179   : > { %v1017_v19 = vadd.f32 %v1016_v9, %v1004_v42 }
 0x17a   : > { %v423_v50 = vpop.permute.xlu0 %422  ;;  %v1075_v17 = vpop.permute.xlu1 %1074 }
 0x17b   : > { %v1030_v14 = vadd.f32 %v1029_v58, %v1017_v19  ;;  %v425_v3 = vsel %vm406_vm4, %v423_v50, 0.0  ;;  %v1081_v34 = vmul.f32 %v1080_v60, %v1075_v17 }
 0x17c   : > { %v2043_v7 = vsel %vm1986_vm5, %v425_v3, 0.0 }
 0x17d   : > { %v1043_v25 = vadd.f32 %v1042_v53, %v1030_v14 }
 0x17e   : > { %v1101_v20 = vpop.permute.xlu1 %1100  ;;  %v1192_v18 = vpop.permute.xlu0 %1191 }
 0x17f   : > { %v1056_v10 = vadd.f32 %v1055_v28, %v1043_v25  ;;  %v1107_v46 = vmul.f32 %v1106_v23, %v1101_v20  ;;  %v1288_v23 = vrot.slane %v2043_v7, %v1696_v24 }
 0x181   : > { %v1069_v33 = vadd.f32 %v1068_v31, %v1056_v10 }
 0x182   : > { %v1127_v61 = vpop.permute.xlu1 %1126  ;;  %v1218_v8 = vpop.permute.xlu0 %1217 }
 0x183   : > { %v1082_v38 = vadd.f32 %v1081_v34, %v1069_v33  ;;  %v1133_v43 = vmul.f32 %v1132_v48, %v1127_v61  ;;  %v1275_v33 = vrot.slane %v2043_v7, %v1692_v22  ;;  %v1314_v48 = vrot.slane %v2043_v7, %v1704_v30 }
 0x185   : > { %v1095_v44 = vadd.f32 %v1094_v36, %v1082_v38 }
 0x186   : > { %v1153_v26 = vpop.permute.xlu1 %1152  ;;  %v1244_v9 = vpop.permute.xlu0 %1243 }
 0x187   : > { %v1108_v29 = vadd.f32 %v1107_v46, %v1095_v44  ;;  %v1159_v62 = vmul.f32 %v1158_v55, %v1153_v26  ;;  %v1301_v44 = vrot.slane %v2043_v7, %v1698_v27 }
 0x189   : > { %v1121_v51 = vadd.f32 %v1120_v47, %v1108_v29 }
 0x18a   : > { %v1179_v54 = vpop.permute.xlu1 %1178  ;;  %v1270_v53 = vpop.permute.xlu0 %1269 }
 0x18b   : > { %v1134_v4 = vadd.f32 %v1133_v43, %v1121_v51  ;;  %v1276_v36 = vmul.f32 %v1275_v33, %v1270_v53  ;;  %v1327_v51 = vrot.slane %v2043_v7, %v1708_v35 }
 0x18d   : > { %v1147_v56 = vadd.f32 %v1146_v41, %v1134_v4  ;;  %v1353_v41 = vrot.slane %v2043_v7, %v1716_v45 }
 0x18e   : > { %v419_v15 = vpop.permute.xlu1 %418  ;;  %v1296_v16 = vpop.permute.xlu0 %1295 }
 0x18f   : > { %v421_v57 = vsel %vm401_vm3, %v419_v15, 0.0  ;;  %v1160_v37 = vadd.f32 %v1159_v62, %v1147_v56 }
 0x190   : > { %v1171_v52 = vrot.slane %v421_v57, %v1692_v22  ;;  %v1184_v63 = vrot.slane %v421_v57, %v1696_v24  ;;  %v1197_v1 = vrot.slane %v421_v57, %v1698_v27  ;;  %v1210_v59 = vrot.slane %v421_v57, %v1704_v30 }
 0x191   : > { %v1223_v58 = vrot.slane %v421_v57, %v1708_v35  ;;  %v1249_v3 = vrot.slane %v421_v57, %v1716_v45  ;;  %v1262_v10 = vrot.slane %v421_v57, %v1720_v49  ;;  %v1340_v27 = vrot.slane %v2043_v7, %v1712_v39 }
 0x192   : > { %v1172_v0 = vmul.f32 %v1171_v52, %v1166_v2  ;;  %v1205_v6 = vpop.permute.xlu1 %1204  ;;  %v1185_v42 = vmul.f32 %v1184_v63, %v1179_v54  ;;  %v1198_v12 = vmul.f32 %v1197_v1, %v1192_v18  ;;  %v1236_v2 = vrot.slane %v421_v57, %v1712_v39  ;;  %v1322_v47 = vpop.permute.xlu0 %1321 }
 0x193   : > { %v1211_v17 = vmul.f32 %v1210_v59, %v1205_v6  ;;  %v1224_v5 = vmul.f32 %v1223_v58, %v1218_v8  ;;  %v1250_v31 = vmul.f32 %v1249_v3, %v1244_v9  ;;  %v1302_v18 = vmul.f32 %v1301_v44, %v1296_v16 }
 0x194   : > { %v1173_v11 = vadd.f32 %v1172_v0, %v1160_v37  ;;  %v1328_v24 = vmul.f32 %v1327_v51, %v1322_v47  ;;  %v1366_v35 = vrot.slane %v2043_v7, %v1720_v49 }
 0x196   : > { %v1186_v19 = vadd.f32 %v1185_v42, %v1173_v11  ;;  %v1231_v13 = vpop.permute.xlu1 %1230  ;;  %v1348_v4 = vpop.permute.xlu0 %1347 }
 0x197   : > { %v1237_v28 = vmul.f32 %v1236_v2, %v1231_v13  ;;  %v1354_v30 = vmul.f32 %v1353_v41, %v1348_v4 }
 0x198   : > { %v1199_v50 = vadd.f32 %v1198_v12, %v1186_v19 }
 0x19a   : > { %v1212_v14 = vadd.f32 %v1211_v17, %v1199_v50  ;;  %v1257_v21 = vpop.permute.xlu1 %1256 }
 0x19b   : > { %v1263_v61 = vmul.f32 %v1262_v10, %v1257_v21 }
 0x19c   : > { %v1225_v25 = vadd.f32 %v1224_v5, %v1212_v14 }
 0x19e   : > { %v1238_v20 = vadd.f32 %v1237_v28, %v1225_v25  ;;  %v1283_v60 = vpop.permute.xlu1 %1282 }
 0x19f   : > { %v1289_v26 = vmul.f32 %v1288_v23, %v1283_v60 }
 0x1a0   : > { %v1251_v34 = vadd.f32 %v1250_v31, %v1238_v20 }
 0x1a2   : > { %v1264_v38 = vadd.f32 %v1263_v61, %v1251_v34  ;;  %v1309_v40 = vpop.permute.xlu1 %1308 }
 0x1a3   : > { %v1315_v32 = vmul.f32 %v1314_v48, %v1309_v40 }
 0x1a4   : > { %v1277_v46 = vadd.f32 %v1276_v36, %v1264_v38 }
 0x1a6   : > { %v1290_v29 = vadd.f32 %v1289_v26, %v1277_v46  ;;  %v1335_v22 = vpop.permute.xlu1 %1334 }
 0x1a7   : > { %v1341_v55 = vmul.f32 %v1340_v27, %v1335_v22 }
 0x1a8   : > { %v1303_v43 = vadd.f32 %v1302_v18, %v1290_v29 }
 0x1aa   : > { %v1316_v54 = vadd.f32 %v1315_v32, %v1303_v43  ;;  %v1361_v56 = vpop.permute.xlu1 %1360 }
 0x1ab   : > { %v1367_v62 = vmul.f32 %v1366_v35, %v1361_v56 }
 0x1ac   : > { %v1329_v8 = vadd.f32 %v1328_v24, %v1316_v54 }
 0x1ae   : > { %v1342_v15 = vadd.f32 %v1341_v55, %v1329_v8 }
 0x1b0   : > { %v1355_v57 = vadd.f32 %v1354_v30, %v1342_v15 }
 0x1b2   : > { %v1368_v52 = vadd.f32 %v1367_v62, %v1355_v57 }
 0x1b4   : > { %1369 = vst.msk [vmem:[%s1975_s27] sm:$0xff] %vm371_vm0, %v1368_v52 }
 0x1b5 PF: > { %s17_s21 = sadd.s32 1, %s1570_s21  }
 0x1b6   : > { %p14_p4 = scmp.ge.s32.totalorder %s17_s21, 4  }
 0x1b8   :  { %16 = sbr.rel (!%p14_p4) target bundleno = 1 (0x1), region = 160 }

</bundles_post_ra>
